<compile_context>
chip_gen: v7x
topology: tpu7x:2x2x1
jax: 0.10.0
libtpu: 0.0.40
codegen_flags: <defaults>
</compile_context>

<pallas_src>
import jax
import jax.numpy as jnp
from jax import lax
from jax.experimental import pallas as pl
from jax.experimental.pallas import tpu as pltpu

# ---------------- model hyper-parameters (small, consistent with the module) --------
NUM_VOCABS = 100
EMBEDDING_DIM = 64
HIDDEN_SIZE = 32
NUM_LAYERS = 1          # module is constructed with num_layers=1
BATCH = 2
SEQ = 8

GATE_PAD = 128          # pad each gate to a full 128-lane boundary


# ---------------------------------- Pallas kernel -----------------------------------
def encoder_gru_kernel(ids_ref, gi_tab_ref, whh_ref, bhn_ref, out_ref):
    """Fused embedding->GRU for the whole sequence in a single invocation.

    ids_ref:    (B, S)       int32, SMEM   token ids
    gi_tab_ref: (Vp, 3*Hp)   f32,  VMEM   per-vocab precomputed input projection
                                          (embedding@W_ih^T + folded biases), gate-
                                          aligned: gate g lives in lanes [g*Hp, g*Hp+H)
    whh_ref:    (H, 3*Hp)    f32,  VMEM   W_hh^T, gate-aligned columns, K kept at H=32
    bhn_ref:    (1, Hp)      f32,  VMEM   b_hh of the n gate (stays inside r*(.))
    out_ref:    (S*B, Hp)    f32,  VMEM   time-major hidden states, lane-dense
    """
    B, S = ids_ref.shape
    H = whh_ref.shape[0]
    Hp = bhn_ref.shape[1]

    # ---- prologue: gather the per-token input projections (off the serial chain) ----
    gi_steps = []
    for t in range(S):
        rows = [gi_tab_ref[pl.ds(ids_ref[b, t], 1), :] for b in range(B)]
        gi_steps.append(jnp.concatenate(rows, axis=0))            # (B, 3*Hp)

    whh = whh_ref[...]                                            # (H, 3*Hp) resident
    b_hn = jnp.broadcast_to(bhn_ref[...], (B, Hp))                # hoisted, built once

    # ---- serial recurrence, fully unrolled (S is small and static) ----
    # Padded lanes [H, Hp) of every gate are exactly zero in gi/whh/bias, and gh is
    # computed from h[:, :H] only, so padded lanes can never contaminate valid lanes.
    h = jnp.zeros((B, Hp), jnp.float32)
    hs = []
    for t in range(S):
        gi_t = gi_steps[t]
        gh = jnp.dot(h[:, :H], whh,
                     preferred_element_type=jnp.float32)          # (B, 3*Hp), K = 32

        # gate slices are 128-lane aligned -> no cross-lane relayout on the chain
        r = jax.nn.sigmoid(gi_t[:, 0:Hp] + gh[:, 0:Hp])
        z = jax.nn.sigmoid(gi_t[:, Hp:2 * Hp] + gh[:, Hp:2 * Hp])
        n = jnp.tanh(gi_t[:, 2 * Hp:3 * Hp] + r * (gh[:, 2 * Hp:3 * Hp] + b_hn))
        h = (1.0 - z) * n + z * h
        hs.append(h)

    # single lane-dense store of the whole (16, 128) slab after the loop
    out_ref[...] = jnp.concatenate(hs, axis=0)


# ----------------------- one-time parameter packing (init, cached) -------------------
def pack_encoder_params(params):
    """Builds the fused token->gates table and packed recurrent weights ONCE.

    This runs outside the jitted forward path (feedback: hoist per-call repacking)."""
    emb = params["embedding"].astype(jnp.float32)                 # (V, E)
    w_ih = params["w_ih"].astype(jnp.float32)                     # (3H, E), gates (r,z,n)
    w_hh = params["w_hh"].astype(jnp.float32)                     # (3H, H)
    b_ih = params["b_ih"].astype(jnp.float32)                     # (3H,)
    b_hh = params["b_hh"].astype(jnp.float32)                     # (3H,)

    V, _E = emb.shape
    H = w_hh.shape[1]
    Hp = GATE_PAD
    Vp = ((V + 7) // 8) * 8                                       # sublane-pad vocab rows

    # Fused embedding + input projection + folded biases, gate-aligned & zero-padded.
    # b_ih (all gates) and b_hh (r,z gates) fold into the table; b_hh(n) stays separate.
    gi_table = jnp.zeros((Vp, 3 * Hp), jnp.float32)
    for g in range(3):
        gate = jnp.dot(emb, w_ih[g * H:(g + 1) * H, :].T,
                       precision=lax.Precision.HIGHEST) + b_ih[g * H:(g + 1) * H]
        if g < 2:                                                 # r, z gates
            gate = gate + b_hh[g * H:(g + 1) * H]
        gi_table = gi_table.at[:V, g * Hp:g * Hp + H].set(gate)

    # W_hh^T with gate-aligned columns; contraction dim kept at K = H (no zero rows).
    whh_packed = jnp.zeros((H, 3 * Hp), jnp.float32)
    for g in range(3):
        whh_packed = whh_packed.at[:, g * Hp:g * Hp + H].set(w_hh[g * H:(g + 1) * H, :].T)

    b_hn = jnp.zeros((1, Hp), jnp.float32).at[0, :H].set(b_hh[2 * H:3 * H])

    return {
        "gi_table": jax.device_put(gi_table),
        "whh": jax.device_put(whh_packed),
        "b_hn": jax.device_put(b_hn),
    }


# ------------------------------ Encoder forward (wrapper) ---------------------------
def encoder_forward(packed, x_tokens):
    """packed: cached output of pack_encoder_params.  x_tokens: (B, S) int32.

    Returns (output (S, B, H), hidden (1, B, H)) matching torch.nn.GRU(num_layers=1)."""
    gi_table = packed["gi_table"]
    whh = packed["whh"]
    b_hn = packed["b_hn"]
    B, S = x_tokens.shape
    H = whh.shape[0]
    Hp = b_hn.shape[1]

    out2d = pl.pallas_call(
        encoder_gru_kernel,
        out_shape=jax.ShapeDtypeStruct((S * B, Hp), jnp.float32),
        in_specs=[
            pl.BlockSpec(memory_space=pltpu.MemorySpace.SMEM),    # token ids
            pl.BlockSpec(memory_space=pltpu.MemorySpace.VMEM),    # fused gi table
            pl.BlockSpec(memory_space=pltpu.MemorySpace.VMEM),    # W_hh^T (packed)
            pl.BlockSpec(memory_space=pltpu.MemorySpace.VMEM),    # b_hn
        ],
        out_specs=pl.BlockSpec(memory_space=pltpu.MemorySpace.VMEM),
    )(x_tokens.astype(jnp.int32), gi_table, whh, b_hn)

    out = out2d.reshape(S, B, Hp)[:, :, :H]                       # drop lane padding
    return out, out[-1][None, :, :]                               # hidden = last step


# --------------------------------- pure-JAX reference --------------------------------
def encoder_reference(params, x_tokens):
    emb = jnp.take(params["embedding"], x_tokens, axis=0)
    emb = jnp.transpose(emb, (1, 0, 2))                           # (S, B, E) time-major
    H = HIDDEN_SIZE
    w_ih, w_hh, b_ih, b_hh = (params["w_ih"], params["w_hh"],
                              params["b_ih"], params["b_hh"])

    def step(h, x_t):
        gi = jnp.dot(x_t, w_ih.T, precision=lax.Precision.HIGHEST) + b_ih
        gh = jnp.dot(h, w_hh.T, precision=lax.Precision.HIGHEST) + b_hh
        i_r, i_z, i_n = gi[:, :H], gi[:, H:2 * H], gi[:, 2 * H:]
        h_r, h_z, h_n = gh[:, :H], gh[:, H:2 * H], gh[:, 2 * H:]
        r = jax.nn.sigmoid(i_r + h_r)
        z = jax.nn.sigmoid(i_z + h_z)
        n = jnp.tanh(i_n + r * h_n)
        h_new = (1.0 - z) * n + z * h
        return h_new, h_new

    h0 = jnp.zeros((x_tokens.shape[0], H), jnp.float32)
    h_last, outs = lax.scan(step, h0, emb)
    return outs, h_last[None, :, :]


# ------------------------------------- main ------------------------------------------
if __name__ == "__main__":
    key = jax.random.PRNGKey(0)
    k_emb, k_wih, k_whh, k_bih, k_bhh, k_x = jax.random.split(key, 6)

    bound = 1.0 / jnp.sqrt(jnp.float32(HIDDEN_SIZE))
    params = {
        "embedding": jax.random.normal(k_emb, (NUM_VOCABS, EMBEDDING_DIM), jnp.float32),
        "w_ih": jax.random.uniform(k_wih, (3 * HIDDEN_SIZE, EMBEDDING_DIM),
                                   jnp.float32, -bound, bound),
        "w_hh": jax.random.uniform(k_whh, (3 * HIDDEN_SIZE, HIDDEN_SIZE),
                                   jnp.float32, -bound, bound),
        "b_ih": jax.random.uniform(k_bih, (3 * HIDDEN_SIZE,), jnp.float32, -bound, bound),
        "b_hh": jax.random.uniform(k_bhh, (3 * HIDDEN_SIZE,), jnp.float32, -bound, bound),
    }

    x_tokens = jax.random.randint(k_x, (BATCH, SEQ), 0, NUM_VOCABS, jnp.int32)

    # one-time packing (cached; NOT on the per-call path)
    packed = pack_encoder_params(params)
    packed = jax.tree_util.tree_map(jax.block_until_ready, packed)

    fwd = jax.jit(encoder_forward)
    out, hidden = fwd(packed, x_tokens)
    out, hidden = jax.block_until_ready((out, hidden))

    ref_out, ref_hidden = encoder_reference(params, x_tokens)

    assert out.shape == (SEQ, BATCH, HIDDEN_SIZE)
    assert hidden.shape == (NUM_LAYERS, BATCH, HIDDEN_SIZE)
    assert jnp.allclose(out, ref_out, atol=1e-4, rtol=1e-4)
    assert jnp.allclose(hidden, ref_hidden, atol=1e-4, rtol=1e-4)

    print("KERNEL_OK")
</pallas_src>

<mosaic_0001>
module attributes {stable_mosaic.version = 11 : i64} {
  func.func @encoder_gru_kernel(%arg0: memref<2x8xi32, #tpu.memory_space<smem>>, %arg1: memref<104x384xf32, #tpu.memory_space<vmem>>, %arg2: memref<32x384xf32, #tpu.memory_space<vmem>>, %arg3: memref<1x128xf32, #tpu.memory_space<vmem>>, %arg4: memref<16x128xf32, #tpu.memory_space<vmem>>) attributes {dimension_semantics = [], scalar_prefetch = 0 : i64, scratch_operands = 0 : i64, tpu.core_type = #tpu.core_type<tc>} {
    %c0 = arith.constant 0 : index
    %c0_0 = arith.constant 0 : index
    %0 = memref.load %arg0[%c0, %c0_0] : memref<2x8xi32, #tpu.memory_space<smem>>
    %1 = arith.index_cast %0 : i32 to index
    %c0_1 = arith.constant 0 : index
    %2 = vector.load %arg1[%1, %c0_1] : memref<104x384xf32, #tpu.memory_space<vmem>>, vector<1x384xf32>
    %c1 = arith.constant 1 : index
    %c0_2 = arith.constant 0 : index
    %3 = memref.load %arg0[%c1, %c0_2] : memref<2x8xi32, #tpu.memory_space<smem>>
    %4 = arith.index_cast %3 : i32 to index
    %c0_3 = arith.constant 0 : index
    %5 = vector.load %arg1[%4, %c0_3] : memref<104x384xf32, #tpu.memory_space<vmem>>, vector<1x384xf32>
    %6 = tpu.concatenate %2, %5 in 0 : vector<1x384xf32>, vector<1x384xf32> -> vector<2x384xf32>
    %c0_4 = arith.constant 0 : index
    %c1_5 = arith.constant 1 : index
    %7 = memref.load %arg0[%c0_4, %c1_5] : memref<2x8xi32, #tpu.memory_space<smem>>
    %8 = arith.index_cast %7 : i32 to index
    %c0_6 = arith.constant 0 : index
    %9 = vector.load %arg1[%8, %c0_6] : memref<104x384xf32, #tpu.memory_space<vmem>>, vector<1x384xf32>
    %c1_7 = arith.constant 1 : index
    %c1_8 = arith.constant 1 : index
    %10 = memref.load %arg0[%c1_7, %c1_8] : memref<2x8xi32, #tpu.memory_space<smem>>
    %11 = arith.index_cast %10 : i32 to index
    %c0_9 = arith.constant 0 : index
    %12 = vector.load %arg1[%11, %c0_9] : memref<104x384xf32, #tpu.memory_space<vmem>>, vector<1x384xf32>
    %13 = tpu.concatenate %9, %12 in 0 : vector<1x384xf32>, vector<1x384xf32> -> vector<2x384xf32>
    %c0_10 = arith.constant 0 : index
    %c2 = arith.constant 2 : index
    %14 = memref.load %arg0[%c0_10, %c2] : memref<2x8xi32, #tpu.memory_space<smem>>
    %15 = arith.index_cast %14 : i32 to index
    %c0_11 = arith.constant 0 : index
    %16 = vector.load %arg1[%15, %c0_11] : memref<104x384xf32, #tpu.memory_space<vmem>>, vector<1x384xf32>
    %c1_12 = arith.constant 1 : index
    %c2_13 = arith.constant 2 : index
    %17 = memref.load %arg0[%c1_12, %c2_13] : memref<2x8xi32, #tpu.memory_space<smem>>
    %18 = arith.index_cast %17 : i32 to index
    %c0_14 = arith.constant 0 : index
    %19 = vector.load %arg1[%18, %c0_14] : memref<104x384xf32, #tpu.memory_space<vmem>>, vector<1x384xf32>
    %20 = tpu.concatenate %16, %19 in 0 : vector<1x384xf32>, vector<1x384xf32> -> vector<2x384xf32>
    %c0_15 = arith.constant 0 : index
    %c3 = arith.constant 3 : index
    %21 = memref.load %arg0[%c0_15, %c3] : memref<2x8xi32, #tpu.memory_space<smem>>
    %22 = arith.index_cast %21 : i32 to index
    %c0_16 = arith.constant 0 : index
    %23 = vector.load %arg1[%22, %c0_16] : memref<104x384xf32, #tpu.memory_space<vmem>>, vector<1x384xf32>
    %c1_17 = arith.constant 1 : index
    %c3_18 = arith.constant 3 : index
    %24 = memref.load %arg0[%c1_17, %c3_18] : memref<2x8xi32, #tpu.memory_space<smem>>
    %25 = arith.index_cast %24 : i32 to index
    %c0_19 = arith.constant 0 : index
    %26 = vector.load %arg1[%25, %c0_19] : memref<104x384xf32, #tpu.memory_space<vmem>>, vector<1x384xf32>
    %27 = tpu.concatenate %23, %26 in 0 : vector<1x384xf32>, vector<1x384xf32> -> vector<2x384xf32>
    %c0_20 = arith.constant 0 : index
    %c4 = arith.constant 4 : index
    %28 = memref.load %arg0[%c0_20, %c4] : memref<2x8xi32, #tpu.memory_space<smem>>
    %29 = arith.index_cast %28 : i32 to index
    %c0_21 = arith.constant 0 : index
    %30 = vector.load %arg1[%29, %c0_21] : memref<104x384xf32, #tpu.memory_space<vmem>>, vector<1x384xf32>
    %c1_22 = arith.constant 1 : index
    %c4_23 = arith.constant 4 : index
    %31 = memref.load %arg0[%c1_22, %c4_23] : memref<2x8xi32, #tpu.memory_space<smem>>
    %32 = arith.index_cast %31 : i32 to index
    %c0_24 = arith.constant 0 : index
    %33 = vector.load %arg1[%32, %c0_24] : memref<104x384xf32, #tpu.memory_space<vmem>>, vector<1x384xf32>
    %34 = tpu.concatenate %30, %33 in 0 : vector<1x384xf32>, vector<1x384xf32> -> vector<2x384xf32>
    %c0_25 = arith.constant 0 : index
    %c5 = arith.constant 5 : index
    %35 = memref.load %arg0[%c0_25, %c5] : memref<2x8xi32, #tpu.memory_space<smem>>
    %36 = arith.index_cast %35 : i32 to index
    %c0_26 = arith.constant 0 : index
    %37 = vector.load %arg1[%36, %c0_26] : memref<104x384xf32, #tpu.memory_space<vmem>>, vector<1x384xf32>
    %c1_27 = arith.constant 1 : index
    %c5_28 = arith.constant 5 : index
    %38 = memref.load %arg0[%c1_27, %c5_28] : memref<2x8xi32, #tpu.memory_space<smem>>
    %39 = arith.index_cast %38 : i32 to index
    %c0_29 = arith.constant 0 : index
    %40 = vector.load %arg1[%39, %c0_29] : memref<104x384xf32, #tpu.memory_space<vmem>>, vector<1x384xf32>
    %41 = tpu.concatenate %37, %40 in 0 : vector<1x384xf32>, vector<1x384xf32> -> vector<2x384xf32>
    %c0_30 = arith.constant 0 : index
    %c6 = arith.constant 6 : index
    %42 = memref.load %arg0[%c0_30, %c6] : memref<2x8xi32, #tpu.memory_space<smem>>
    %43 = arith.index_cast %42 : i32 to index
    %c0_31 = arith.constant 0 : index
    %44 = vector.load %arg1[%43, %c0_31] : memref<104x384xf32, #tpu.memory_space<vmem>>, vector<1x384xf32>
    %c1_32 = arith.constant 1 : index
    %c6_33 = arith.constant 6 : index
    %45 = memref.load %arg0[%c1_32, %c6_33] : memref<2x8xi32, #tpu.memory_space<smem>>
    %46 = arith.index_cast %45 : i32 to index
    %c0_34 = arith.constant 0 : index
    %47 = vector.load %arg1[%46, %c0_34] : memref<104x384xf32, #tpu.memory_space<vmem>>, vector<1x384xf32>
    %48 = tpu.concatenate %44, %47 in 0 : vector<1x384xf32>, vector<1x384xf32> -> vector<2x384xf32>
    %c0_35 = arith.constant 0 : index
    %c7 = arith.constant 7 : index
    %49 = memref.load %arg0[%c0_35, %c7] : memref<2x8xi32, #tpu.memory_space<smem>>
    %50 = arith.index_cast %49 : i32 to index
    %c0_36 = arith.constant 0 : index
    %51 = vector.load %arg1[%50, %c0_36] : memref<104x384xf32, #tpu.memory_space<vmem>>, vector<1x384xf32>
    %c1_37 = arith.constant 1 : index
    %c7_38 = arith.constant 7 : index
    %52 = memref.load %arg0[%c1_37, %c7_38] : memref<2x8xi32, #tpu.memory_space<smem>>
    %53 = arith.index_cast %52 : i32 to index
    %c0_39 = arith.constant 0 : index
    %54 = vector.load %arg1[%53, %c0_39] : memref<104x384xf32, #tpu.memory_space<vmem>>, vector<1x384xf32>
    %55 = tpu.concatenate %51, %54 in 0 : vector<1x384xf32>, vector<1x384xf32> -> vector<2x384xf32>
    %c0_40 = arith.constant 0 : index
    %c0_41 = arith.constant 0 : index
    %56 = vector.load %arg2[%c0_40, %c0_41] : memref<32x384xf32, #tpu.memory_space<vmem>>, vector<32x384xf32>
    %c0_42 = arith.constant 0 : index
    %c0_43 = arith.constant 0 : index
    %57 = vector.load %arg3[%c0_42, %c0_43] : memref<1x128xf32, #tpu.memory_space<vmem>>, vector<1x128xf32>
    %58 = vector.shape_cast %57 : vector<1x128xf32> to vector<1x128xf32>
    %59 = vector.broadcast %58 : vector<1x128xf32> to vector<2x128xf32>
    %cst = arith.constant 0.000000e+00 : f32
    %60 = vector.broadcast %cst : f32 to vector<2x128xf32>
    %61 = vector.extract_strided_slice %60 {offsets = [0, 0], sizes = [2, 32], strides = [1, 1]} : vector<2x128xf32> to vector<2x32xf32>
    %cst_44 = arith.constant dense<0.000000e+00> : vector<2x384xf32>
    %62 = tpu.matmul %61, %56, %cst_44 {dimension_numbers = #tpu.dot_dimension_numbers<[1], [0], [0], [1], [0, 0, 1, 1], [], []>} : vector<2x32xf32>, vector<32x384xf32>, vector<2x384xf32> -> vector<2x384xf32>
    %63 = vector.extract_strided_slice %6 {offsets = [0, 0], sizes = [2, 128], strides = [1, 1]} : vector<2x384xf32> to vector<2x128xf32>
    %64 = vector.extract_strided_slice %62 {offsets = [0, 0], sizes = [2, 128], strides = [1, 1]} : vector<2x384xf32> to vector<2x128xf32>
    %65 = arith.addf %63, %64 : vector<2x128xf32>
    %66 = arith.negf %65 : vector<2x128xf32>
    %67 = math.exp %66 : vector<2x128xf32>
    %cst_45 = arith.constant 1.000000e+00 : f32
    %68 = vector.broadcast %cst_45 : f32 to vector<2x128xf32>
    %69 = arith.addf %68, %67 : vector<2x128xf32>
    %70 = arith.divf %68, %69 : vector<2x128xf32>
    %71 = vector.extract_strided_slice %6 {offsets = [0, 128], sizes = [2, 128], strides = [1, 1]} : vector<2x384xf32> to vector<2x128xf32>
    %72 = vector.extract_strided_slice %62 {offsets = [0, 128], sizes = [2, 128], strides = [1, 1]} : vector<2x384xf32> to vector<2x128xf32>
    %73 = arith.addf %71, %72 : vector<2x128xf32>
    %74 = arith.negf %73 : vector<2x128xf32>
    %75 = math.exp %74 : vector<2x128xf32>
    %cst_46 = arith.constant 1.000000e+00 : f32
    %76 = vector.broadcast %cst_46 : f32 to vector<2x128xf32>
    %77 = arith.addf %76, %75 : vector<2x128xf32>
    %78 = arith.divf %76, %77 : vector<2x128xf32>
    %79 = vector.extract_strided_slice %6 {offsets = [0, 256], sizes = [2, 128], strides = [1, 1]} : vector<2x384xf32> to vector<2x128xf32>
    %80 = vector.extract_strided_slice %62 {offsets = [0, 256], sizes = [2, 128], strides = [1, 1]} : vector<2x384xf32> to vector<2x128xf32>
    %81 = arith.addf %80, %59 : vector<2x128xf32>
    %82 = arith.mulf %70, %81 : vector<2x128xf32>
    %83 = arith.addf %79, %82 : vector<2x128xf32>
    %84 = math.tanh %83 : vector<2x128xf32>
    %cst_47 = arith.constant 1.000000e+00 : f32
    %85 = vector.broadcast %cst_47 : f32 to vector<2x128xf32>
    %86 = arith.subf %85, %78 : vector<2x128xf32>
    %87 = arith.mulf %86, %84 : vector<2x128xf32>
    %88 = arith.mulf %78, %60 : vector<2x128xf32>
    %89 = arith.addf %87, %88 : vector<2x128xf32>
    %90 = vector.extract_strided_slice %89 {offsets = [0, 0], sizes = [2, 32], strides = [1, 1]} : vector<2x128xf32> to vector<2x32xf32>
    %cst_48 = arith.constant dense<0.000000e+00> : vector<2x384xf32>
    %91 = tpu.matmul %90, %56, %cst_48 {dimension_numbers = #tpu.dot_dimension_numbers<[1], [0], [0], [1], [0, 0, 1, 1], [], []>} : vector<2x32xf32>, vector<32x384xf32>, vector<2x384xf32> -> vector<2x384xf32>
    %92 = vector.extract_strided_slice %13 {offsets = [0, 0], sizes = [2, 128], strides = [1, 1]} : vector<2x384xf32> to vector<2x128xf32>
    %93 = vector.extract_strided_slice %91 {offsets = [0, 0], sizes = [2, 128], strides = [1, 1]} : vector<2x384xf32> to vector<2x128xf32>
    %94 = arith.addf %92, %93 : vector<2x128xf32>
    %95 = arith.negf %94 : vector<2x128xf32>
    %96 = math.exp %95 : vector<2x128xf32>
    %cst_49 = arith.constant 1.000000e+00 : f32
    %97 = vector.broadcast %cst_49 : f32 to vector<2x128xf32>
    %98 = arith.addf %97, %96 : vector<2x128xf32>
    %99 = arith.divf %97, %98 : vector<2x128xf32>
    %100 = vector.extract_strided_slice %13 {offsets = [0, 128], sizes = [2, 128], strides = [1, 1]} : vector<2x384xf32> to vector<2x128xf32>
    %101 = vector.extract_strided_slice %91 {offsets = [0, 128], sizes = [2, 128], strides = [1, 1]} : vector<2x384xf32> to vector<2x128xf32>
    %102 = arith.addf %100, %101 : vector<2x128xf32>
    %103 = arith.negf %102 : vector<2x128xf32>
    %104 = math.exp %103 : vector<2x128xf32>
    %cst_50 = arith.constant 1.000000e+00 : f32
    %105 = vector.broadcast %cst_50 : f32 to vector<2x128xf32>
    %106 = arith.addf %105, %104 : vector<2x128xf32>
    %107 = arith.divf %105, %106 : vector<2x128xf32>
    %108 = vector.extract_strided_slice %13 {offsets = [0, 256], sizes = [2, 128], strides = [1, 1]} : vector<2x384xf32> to vector<2x128xf32>
    %109 = vector.extract_strided_slice %91 {offsets = [0, 256], sizes = [2, 128], strides = [1, 1]} : vector<2x384xf32> to vector<2x128xf32>
    %110 = arith.addf %109, %59 : vector<2x128xf32>
    %111 = arith.mulf %99, %110 : vector<2x128xf32>
    %112 = arith.addf %108, %111 : vector<2x128xf32>
    %113 = math.tanh %112 : vector<2x128xf32>
    %cst_51 = arith.constant 1.000000e+00 : f32
    %114 = vector.broadcast %cst_51 : f32 to vector<2x128xf32>
    %115 = arith.subf %114, %107 : vector<2x128xf32>
    %116 = arith.mulf %115, %113 : vector<2x128xf32>
    %117 = arith.mulf %107, %89 : vector<2x128xf32>
    %118 = arith.addf %116, %117 : vector<2x128xf32>
    %119 = vector.extract_strided_slice %118 {offsets = [0, 0], sizes = [2, 32], strides = [1, 1]} : vector<2x128xf32> to vector<2x32xf32>
    %cst_52 = arith.constant dense<0.000000e+00> : vector<2x384xf32>
    %120 = tpu.matmul %119, %56, %cst_52 {dimension_numbers = #tpu.dot_dimension_numbers<[1], [0], [0], [1], [0, 0, 1, 1], [], []>} : vector<2x32xf32>, vector<32x384xf32>, vector<2x384xf32> -> vector<2x384xf32>
    %121 = vector.extract_strided_slice %20 {offsets = [0, 0], sizes = [2, 128], strides = [1, 1]} : vector<2x384xf32> to vector<2x128xf32>
    %122 = vector.extract_strided_slice %120 {offsets = [0, 0], sizes = [2, 128], strides = [1, 1]} : vector<2x384xf32> to vector<2x128xf32>
    %123 = arith.addf %121, %122 : vector<2x128xf32>
    %124 = arith.negf %123 : vector<2x128xf32>
    %125 = math.exp %124 : vector<2x128xf32>
    %cst_53 = arith.constant 1.000000e+00 : f32
    %126 = vector.broadcast %cst_53 : f32 to vector<2x128xf32>
    %127 = arith.addf %126, %125 : vector<2x128xf32>
    %128 = arith.divf %126, %127 : vector<2x128xf32>
    %129 = vector.extract_strided_slice %20 {offsets = [0, 128], sizes = [2, 128], strides = [1, 1]} : vector<2x384xf32> to vector<2x128xf32>
    %130 = vector.extract_strided_slice %120 {offsets = [0, 128], sizes = [2, 128], strides = [1, 1]} : vector<2x384xf32> to vector<2x128xf32>
    %131 = arith.addf %129, %130 : vector<2x128xf32>
    %132 = arith.negf %131 : vector<2x128xf32>
    %133 = math.exp %132 : vector<2x128xf32>
    %cst_54 = arith.constant 1.000000e+00 : f32
    %134 = vector.broadcast %cst_54 : f32 to vector<2x128xf32>
    %135 = arith.addf %134, %133 : vector<2x128xf32>
    %136 = arith.divf %134, %135 : vector<2x128xf32>
    %137 = vector.extract_strided_slice %20 {offsets = [0, 256], sizes = [2, 128], strides = [1, 1]} : vector<2x384xf32> to vector<2x128xf32>
    %138 = vector.extract_strided_slice %120 {offsets = [0, 256], sizes = [2, 128], strides = [1, 1]} : vector<2x384xf32> to vector<2x128xf32>
    %139 = arith.addf %138, %59 : vector<2x128xf32>
    %140 = arith.mulf %128, %139 : vector<2x128xf32>
    %141 = arith.addf %137, %140 : vector<2x128xf32>
    %142 = math.tanh %141 : vector<2x128xf32>
    %cst_55 = arith.constant 1.000000e+00 : f32
    %143 = vector.broadcast %cst_55 : f32 to vector<2x128xf32>
    %144 = arith.subf %143, %136 : vector<2x128xf32>
    %145 = arith.mulf %144, %142 : vector<2x128xf32>
    %146 = arith.mulf %136, %118 : vector<2x128xf32>
    %147 = arith.addf %145, %146 : vector<2x128xf32>
    %148 = vector.extract_strided_slice %147 {offsets = [0, 0], sizes = [2, 32], strides = [1, 1]} : vector<2x128xf32> to vector<2x32xf32>
    %cst_56 = arith.constant dense<0.000000e+00> : vector<2x384xf32>
    %149 = tpu.matmul %148, %56, %cst_56 {dimension_numbers = #tpu.dot_dimension_numbers<[1], [0], [0], [1], [0, 0, 1, 1], [], []>} : vector<2x32xf32>, vector<32x384xf32>, vector<2x384xf32> -> vector<2x384xf32>
    %150 = vector.extract_strided_slice %27 {offsets = [0, 0], sizes = [2, 128], strides = [1, 1]} : vector<2x384xf32> to vector<2x128xf32>
    %151 = vector.extract_strided_slice %149 {offsets = [0, 0], sizes = [2, 128], strides = [1, 1]} : vector<2x384xf32> to vector<2x128xf32>
    %152 = arith.addf %150, %151 : vector<2x128xf32>
    %153 = arith.negf %152 : vector<2x128xf32>
    %154 = math.exp %153 : vector<2x128xf32>
    %cst_57 = arith.constant 1.000000e+00 : f32
    %155 = vector.broadcast %cst_57 : f32 to vector<2x128xf32>
    %156 = arith.addf %155, %154 : vector<2x128xf32>
    %157 = arith.divf %155, %156 : vector<2x128xf32>
    %158 = vector.extract_strided_slice %27 {offsets = [0, 128], sizes = [2, 128], strides = [1, 1]} : vector<2x384xf32> to vector<2x128xf32>
    %159 = vector.extract_strided_slice %149 {offsets = [0, 128], sizes = [2, 128], strides = [1, 1]} : vector<2x384xf32> to vector<2x128xf32>
    %160 = arith.addf %158, %159 : vector<2x128xf32>
    %161 = arith.negf %160 : vector<2x128xf32>
    %162 = math.exp %161 : vector<2x128xf32>
    %cst_58 = arith.constant 1.000000e+00 : f32
    %163 = vector.broadcast %cst_58 : f32 to vector<2x128xf32>
    %164 = arith.addf %163, %162 : vector<2x128xf32>
    %165 = arith.divf %163, %164 : vector<2x128xf32>
    %166 = vector.extract_strided_slice %27 {offsets = [0, 256], sizes = [2, 128], strides = [1, 1]} : vector<2x384xf32> to vector<2x128xf32>
    %167 = vector.extract_strided_slice %149 {offsets = [0, 256], sizes = [2, 128], strides = [1, 1]} : vector<2x384xf32> to vector<2x128xf32>
    %168 = arith.addf %167, %59 : vector<2x128xf32>
    %169 = arith.mulf %157, %168 : vector<2x128xf32>
    %170 = arith.addf %166, %169 : vector<2x128xf32>
    %171 = math.tanh %170 : vector<2x128xf32>
    %cst_59 = arith.constant 1.000000e+00 : f32
    %172 = vector.broadcast %cst_59 : f32 to vector<2x128xf32>
    %173 = arith.subf %172, %165 : vector<2x128xf32>
    %174 = arith.mulf %173, %171 : vector<2x128xf32>
    %175 = arith.mulf %165, %147 : vector<2x128xf32>
    %176 = arith.addf %174, %175 : vector<2x128xf32>
    %177 = vector.extract_strided_slice %176 {offsets = [0, 0], sizes = [2, 32], strides = [1, 1]} : vector<2x128xf32> to vector<2x32xf32>
    %cst_60 = arith.constant dense<0.000000e+00> : vector<2x384xf32>
    %178 = tpu.matmul %177, %56, %cst_60 {dimension_numbers = #tpu.dot_dimension_numbers<[1], [0], [0], [1], [0, 0, 1, 1], [], []>} : vector<2x32xf32>, vector<32x384xf32>, vector<2x384xf32> -> vector<2x384xf32>
    %179 = vector.extract_strided_slice %34 {offsets = [0, 0], sizes = [2, 128], strides = [1, 1]} : vector<2x384xf32> to vector<2x128xf32>
    %180 = vector.extract_strided_slice %178 {offsets = [0, 0], sizes = [2, 128], strides = [1, 1]} : vector<2x384xf32> to vector<2x128xf32>
    %181 = arith.addf %179, %180 : vector<2x128xf32>
    %182 = arith.negf %181 : vector<2x128xf32>
    %183 = math.exp %182 : vector<2x128xf32>
    %cst_61 = arith.constant 1.000000e+00 : f32
    %184 = vector.broadcast %cst_61 : f32 to vector<2x128xf32>
    %185 = arith.addf %184, %183 : vector<2x128xf32>
    %186 = arith.divf %184, %185 : vector<2x128xf32>
    %187 = vector.extract_strided_slice %34 {offsets = [0, 128], sizes = [2, 128], strides = [1, 1]} : vector<2x384xf32> to vector<2x128xf32>
    %188 = vector.extract_strided_slice %178 {offsets = [0, 128], sizes = [2, 128], strides = [1, 1]} : vector<2x384xf32> to vector<2x128xf32>
    %189 = arith.addf %187, %188 : vector<2x128xf32>
    %190 = arith.negf %189 : vector<2x128xf32>
    %191 = math.exp %190 : vector<2x128xf32>
    %cst_62 = arith.constant 1.000000e+00 : f32
    %192 = vector.broadcast %cst_62 : f32 to vector<2x128xf32>
    %193 = arith.addf %192, %191 : vector<2x128xf32>
    %194 = arith.divf %192, %193 : vector<2x128xf32>
    %195 = vector.extract_strided_slice %34 {offsets = [0, 256], sizes = [2, 128], strides = [1, 1]} : vector<2x384xf32> to vector<2x128xf32>
    %196 = vector.extract_strided_slice %178 {offsets = [0, 256], sizes = [2, 128], strides = [1, 1]} : vector<2x384xf32> to vector<2x128xf32>
    %197 = arith.addf %196, %59 : vector<2x128xf32>
    %198 = arith.mulf %186, %197 : vector<2x128xf32>
    %199 = arith.addf %195, %198 : vector<2x128xf32>
    %200 = math.tanh %199 : vector<2x128xf32>
    %cst_63 = arith.constant 1.000000e+00 : f32
    %201 = vector.broadcast %cst_63 : f32 to vector<2x128xf32>
    %202 = arith.subf %201, %194 : vector<2x128xf32>
    %203 = arith.mulf %202, %200 : vector<2x128xf32>
    %204 = arith.mulf %194, %176 : vector<2x128xf32>
    %205 = arith.addf %203, %204 : vector<2x128xf32>
    %206 = vector.extract_strided_slice %205 {offsets = [0, 0], sizes = [2, 32], strides = [1, 1]} : vector<2x128xf32> to vector<2x32xf32>
    %cst_64 = arith.constant dense<0.000000e+00> : vector<2x384xf32>
    %207 = tpu.matmul %206, %56, %cst_64 {dimension_numbers = #tpu.dot_dimension_numbers<[1], [0], [0], [1], [0, 0, 1, 1], [], []>} : vector<2x32xf32>, vector<32x384xf32>, vector<2x384xf32> -> vector<2x384xf32>
    %208 = vector.extract_strided_slice %41 {offsets = [0, 0], sizes = [2, 128], strides = [1, 1]} : vector<2x384xf32> to vector<2x128xf32>
    %209 = vector.extract_strided_slice %207 {offsets = [0, 0], sizes = [2, 128], strides = [1, 1]} : vector<2x384xf32> to vector<2x128xf32>
    %210 = arith.addf %208, %209 : vector<2x128xf32>
    %211 = arith.negf %210 : vector<2x128xf32>
    %212 = math.exp %211 : vector<2x128xf32>
    %cst_65 = arith.constant 1.000000e+00 : f32
    %213 = vector.broadcast %cst_65 : f32 to vector<2x128xf32>
    %214 = arith.addf %213, %212 : vector<2x128xf32>
    %215 = arith.divf %213, %214 : vector<2x128xf32>
    %216 = vector.extract_strided_slice %41 {offsets = [0, 128], sizes = [2, 128], strides = [1, 1]} : vector<2x384xf32> to vector<2x128xf32>
    %217 = vector.extract_strided_slice %207 {offsets = [0, 128], sizes = [2, 128], strides = [1, 1]} : vector<2x384xf32> to vector<2x128xf32>
    %218 = arith.addf %216, %217 : vector<2x128xf32>
    %219 = arith.negf %218 : vector<2x128xf32>
    %220 = math.exp %219 : vector<2x128xf32>
    %cst_66 = arith.constant 1.000000e+00 : f32
    %221 = vector.broadcast %cst_66 : f32 to vector<2x128xf32>
    %222 = arith.addf %221, %220 : vector<2x128xf32>
    %223 = arith.divf %221, %222 : vector<2x128xf32>
    %224 = vector.extract_strided_slice %41 {offsets = [0, 256], sizes = [2, 128], strides = [1, 1]} : vector<2x384xf32> to vector<2x128xf32>
    %225 = vector.extract_strided_slice %207 {offsets = [0, 256], sizes = [2, 128], strides = [1, 1]} : vector<2x384xf32> to vector<2x128xf32>
    %226 = arith.addf %225, %59 : vector<2x128xf32>
    %227 = arith.mulf %215, %226 : vector<2x128xf32>
    %228 = arith.addf %224, %227 : vector<2x128xf32>
    %229 = math.tanh %228 : vector<2x128xf32>
    %cst_67 = arith.constant 1.000000e+00 : f32
    %230 = vector.broadcast %cst_67 : f32 to vector<2x128xf32>
    %231 = arith.subf %230, %223 : vector<2x128xf32>
    %232 = arith.mulf %231, %229 : vector<2x128xf32>
    %233 = arith.mulf %223, %205 : vector<2x128xf32>
    %234 = arith.addf %232, %233 : vector<2x128xf32>
    %235 = vector.extract_strided_slice %234 {offsets = [0, 0], sizes = [2, 32], strides = [1, 1]} : vector<2x128xf32> to vector<2x32xf32>
    %cst_68 = arith.constant dense<0.000000e+00> : vector<2x384xf32>
    %236 = tpu.matmul %235, %56, %cst_68 {dimension_numbers = #tpu.dot_dimension_numbers<[1], [0], [0], [1], [0, 0, 1, 1], [], []>} : vector<2x32xf32>, vector<32x384xf32>, vector<2x384xf32> -> vector<2x384xf32>
    %237 = vector.extract_strided_slice %48 {offsets = [0, 0], sizes = [2, 128], strides = [1, 1]} : vector<2x384xf32> to vector<2x128xf32>
    %238 = vector.extract_strided_slice %236 {offsets = [0, 0], sizes = [2, 128], strides = [1, 1]} : vector<2x384xf32> to vector<2x128xf32>
    %239 = arith.addf %237, %238 : vector<2x128xf32>
    %240 = arith.negf %239 : vector<2x128xf32>
    %241 = math.exp %240 : vector<2x128xf32>
    %cst_69 = arith.constant 1.000000e+00 : f32
    %242 = vector.broadcast %cst_69 : f32 to vector<2x128xf32>
    %243 = arith.addf %242, %241 : vector<2x128xf32>
    %244 = arith.divf %242, %243 : vector<2x128xf32>
    %245 = vector.extract_strided_slice %48 {offsets = [0, 128], sizes = [2, 128], strides = [1, 1]} : vector<2x384xf32> to vector<2x128xf32>
    %246 = vector.extract_strided_slice %236 {offsets = [0, 128], sizes = [2, 128], strides = [1, 1]} : vector<2x384xf32> to vector<2x128xf32>
    %247 = arith.addf %245, %246 : vector<2x128xf32>
    %248 = arith.negf %247 : vector<2x128xf32>
    %249 = math.exp %248 : vector<2x128xf32>
    %cst_70 = arith.constant 1.000000e+00 : f32
    %250 = vector.broadcast %cst_70 : f32 to vector<2x128xf32>
    %251 = arith.addf %250, %249 : vector<2x128xf32>
    %252 = arith.divf %250, %251 : vector<2x128xf32>
    %253 = vector.extract_strided_slice %48 {offsets = [0, 256], sizes = [2, 128], strides = [1, 1]} : vector<2x384xf32> to vector<2x128xf32>
    %254 = vector.extract_strided_slice %236 {offsets = [0, 256], sizes = [2, 128], strides = [1, 1]} : vector<2x384xf32> to vector<2x128xf32>
    %255 = arith.addf %254, %59 : vector<2x128xf32>
    %256 = arith.mulf %244, %255 : vector<2x128xf32>
    %257 = arith.addf %253, %256 : vector<2x128xf32>
    %258 = math.tanh %257 : vector<2x128xf32>
    %cst_71 = arith.constant 1.000000e+00 : f32
    %259 = vector.broadcast %cst_71 : f32 to vector<2x128xf32>
    %260 = arith.subf %259, %252 : vector<2x128xf32>
    %261 = arith.mulf %260, %258 : vector<2x128xf32>
    %262 = arith.mulf %252, %234 : vector<2x128xf32>
    %263 = arith.addf %261, %262 : vector<2x128xf32>
    %264 = vector.extract_strided_slice %263 {offsets = [0, 0], sizes = [2, 32], strides = [1, 1]} : vector<2x128xf32> to vector<2x32xf32>
    %cst_72 = arith.constant dense<0.000000e+00> : vector<2x384xf32>
    %265 = tpu.matmul %264, %56, %cst_72 {dimension_numbers = #tpu.dot_dimension_numbers<[1], [0], [0], [1], [0, 0, 1, 1], [], []>} : vector<2x32xf32>, vector<32x384xf32>, vector<2x384xf32> -> vector<2x384xf32>
    %266 = vector.extract_strided_slice %55 {offsets = [0, 0], sizes = [2, 128], strides = [1, 1]} : vector<2x384xf32> to vector<2x128xf32>
    %267 = vector.extract_strided_slice %265 {offsets = [0, 0], sizes = [2, 128], strides = [1, 1]} : vector<2x384xf32> to vector<2x128xf32>
    %268 = arith.addf %266, %267 : vector<2x128xf32>
    %269 = arith.negf %268 : vector<2x128xf32>
    %270 = math.exp %269 : vector<2x128xf32>
    %cst_73 = arith.constant 1.000000e+00 : f32
    %271 = vector.broadcast %cst_73 : f32 to vector<2x128xf32>
    %272 = arith.addf %271, %270 : vector<2x128xf32>
    %273 = arith.divf %271, %272 : vector<2x128xf32>
    %274 = vector.extract_strided_slice %55 {offsets = [0, 128], sizes = [2, 128], strides = [1, 1]} : vector<2x384xf32> to vector<2x128xf32>
    %275 = vector.extract_strided_slice %265 {offsets = [0, 128], sizes = [2, 128], strides = [1, 1]} : vector<2x384xf32> to vector<2x128xf32>
    %276 = arith.addf %274, %275 : vector<2x128xf32>
    %277 = arith.negf %276 : vector<2x128xf32>
    %278 = math.exp %277 : vector<2x128xf32>
    %cst_74 = arith.constant 1.000000e+00 : f32
    %279 = vector.broadcast %cst_74 : f32 to vector<2x128xf32>
    %280 = arith.addf %279, %278 : vector<2x128xf32>
    %281 = arith.divf %279, %280 : vector<2x128xf32>
    %282 = vector.extract_strided_slice %55 {offsets = [0, 256], sizes = [2, 128], strides = [1, 1]} : vector<2x384xf32> to vector<2x128xf32>
    %283 = vector.extract_strided_slice %265 {offsets = [0, 256], sizes = [2, 128], strides = [1, 1]} : vector<2x384xf32> to vector<2x128xf32>
    %284 = arith.addf %283, %59 : vector<2x128xf32>
    %285 = arith.mulf %273, %284 : vector<2x128xf32>
    %286 = arith.addf %282, %285 : vector<2x128xf32>
    %287 = math.tanh %286 : vector<2x128xf32>
    %cst_75 = arith.constant 1.000000e+00 : f32
    %288 = vector.broadcast %cst_75 : f32 to vector<2x128xf32>
    %289 = arith.subf %288, %281 : vector<2x128xf32>
    %290 = arith.mulf %289, %287 : vector<2x128xf32>
    %291 = arith.mulf %281, %263 : vector<2x128xf32>
    %292 = arith.addf %290, %291 : vector<2x128xf32>
    %293 = tpu.concatenate %89, %118, %147, %176, %205, %234, %263, %292 in 0 : vector<2x128xf32>, vector<2x128xf32>, vector<2x128xf32>, vector<2x128xf32>, vector<2x128xf32>, vector<2x128xf32>, vector<2x128xf32>, vector<2x128xf32> -> vector<16x128xf32>
    %c0_76 = arith.constant 0 : index
    %c0_77 = arith.constant 0 : index
    %294 = vector.load %arg4[%c0_76, %c0_77] : memref<16x128xf32, #tpu.memory_space<vmem>>, vector<16x128xf32>
    tpu.vector_store %arg4[%c0_76, %c0_77], %293 {strides = array<i32>} : memref<16x128xf32, #tpu.memory_space<vmem>>, vector<16x128xf32>,
    return
  }
}

</mosaic_0001>

<bundles_post_ra>
// kernel: encoder_forward.1
= control target key start
LH: loop header
LB: loop body
LE: loop exit
PB: predicated region body
PF: predicated region fallthrough
CT: control target
= control target key end

     0   :  { %9 = vsyncpa [#allocation4], 0  ;;  %s2743_s0 = inlined_call_operand.vmem [shape: s32[2,8], index: 0, kind: input, shape index: {}]   ;;  %s2744_s1 = inlined_call_operand.hbm [shape: f32[104,384], index: 1, kind: input, shape index: {}]   ;;  %s2745_s2 = inlined_call_operand.hbm [shape: f32[32,384], index: 2, kind: input, shape index: {}]   ;;  %s2746_s3 = inlined_call_operand.hbm [shape: f32[1,128], index: 3, kind: input, shape index: {}]   ;;  %s2747_s4 = inlined_call_operand.vmem [shape: f32[16,128], index: 4, kind: output, shape index: {}]  }
   0x1   :  { %10 = vsyncpa [#allocation3], 0 }
   0x2   :  { %11 = vsyncpa [#allocation7], 0  ;;  %s18_s17 = sshll.u32 %s2743_s0, 4  ;;  %s2412_s18 = smov [#allocation6]   ;;  %s19_s17 = int_to_ptr.vmem [resolvable:$true] %s18_s17 }
   0x3   :  { %s39_s19 = sshll.u32 %s2412_s18, 4  ;;  %s2328_s22 = scalar_lea.hbm %s2745_s2, 1536  ;;  %s40_s19 = int_to_ptr.vmem [resolvable:$true] %s39_s19 }
   0x4   :  { %p2329_p0 = scmp.ne.s32.totalorder %s2745_s2, %s2328_s22  ;;  %p2332_p1 = scmp.lt.u32.totalorder %s2328_s22, %s2745_s2 }
   0x6   :  { %p2334_p2 = pnand %p2332_p1, %p2329_p0 }
   0x8   :  { %2337 = shalt.err (!%p2334_p2)
}
   0x9   :  { %s2338_s27 = scalar_lea.vmem %s40_s19, 1536  ;;  %p2343_p4 = scmp.lt.s32.totalorder %s40_s19, %s40_s19 }
   0xa   :  { %p2339_p3 = scmp.ne.s32.totalorder %s40_s19, %s2338_s27  ;;  %p2344_p5 = scmp.lt.s32.totalorder %s2338_s27, %s2338_s27 }
   0xc   :  { %p2345_p6 = por %p2344_p5, %p2343_p4 }
   0xe   :  { %p2346_p7 = pnand %p2345_p6, %p2339_p3 }
  0x10   :  { %2349 = shalt.err (!%p2346_p7)
}
  0x11   :  { %s2413_s0 = smov 384   ;;  %s2414_s28 = smov 24  }
  0x12   :  { %45 = dma.hbm_to_vmem [thread:$0]  %s2745_s2, 1536, %s40_s19, [#allocation7], %s2413_s0, %s2413_s0, %s2414_s28  }
  0x13   :  { %s2350_s5 = scalar_lea.vmem %s19_s17, 32  ;;  %p2355_p9 = scmp.lt.s32.totalorder %s19_s17, %s19_s17 }
  0x14   :  { %p2351_p8 = scmp.ne.s32.totalorder %s19_s17, %s2350_s5  ;;  %p2356_p10 = scmp.lt.s32.totalorder %s2350_s5, %s2350_s5 }
  0x16   :  { %p2357_p11 = por %p2356_p10, %p2355_p9 }
  0x18   :  { %p2358_p12 = pnand %p2357_p11, %p2351_p8 }
  0x1a   :  { %2361 = shalt.err (!%p2358_p12)
}
  0x1b   :  { %s2415_s6 = smov [#allocation2]   ;;  %s2416_s7 = smov [#allocation5]  }
  0x1c   :  { %21 = dma.vmem_to_smem %s19_s17, 32, %s2415_s6, [#allocation4]  }
  0x1d   :  { %s27_s8 = sshll.u32 %s2416_s7, 4  ;;  %s2417_s9 = smov [#allocation8]   ;;  %s28_s8 = int_to_ptr.vmem [resolvable:$true] %s27_s8 }
  0x1e   :  { %s52_s10 = sshll.u32 %s2417_s9, 4  ;;  %s2362_s13 = scalar_lea.hbm %s2744_s1, 4992  ;;  %s53_s10 = int_to_ptr.vmem [resolvable:$true] %s52_s10 }
  0x1f   :  { %p2363_p13 = scmp.ne.s32.totalorder %s2744_s1, %s2362_s13  ;;  %p2366_p0 = scmp.lt.u32.totalorder %s2362_s13, %s2744_s1 }
  0x21   :  { %p2368_p1 = pnand %p2366_p0, %p2363_p13 }
  0x23   :  { %2371 = shalt.err (!%p2368_p1)
}
  0x24   :  { %s2372_s17 = scalar_lea.vmem %s28_s8, 4992  ;;  %p2377_p3 = scmp.lt.s32.totalorder %s28_s8, %s28_s8 }
  0x25   :  { %p2373_p2 = scmp.ne.s32.totalorder %s28_s8, %s2372_s17  ;;  %p2378_p4 = scmp.lt.s32.totalorder %s2372_s17, %s2372_s17 }
  0x27   :  { %p2379_p5 = por %p2378_p4, %p2377_p3 }
  0x29   :  { %p2380_p6 = pnand %p2379_p5, %p2373_p2 }
  0x2b   :  { %2383 = shalt.err (!%p2380_p6)
}
  0x2c   :  { %33 = dma.hbm_to_vmem [thread:$0]  %s2744_s1, 4992, %s28_s8, [#allocation3], %s2413_s0, %s2413_s0, %s2414_s28  }
  0x2d   :  { %s2384_s22 = scalar_lea.hbm %s2746_s3, 16 }
  0x2e   :  { %p2385_p7 = scmp.ne.s32.totalorder %s2746_s3, %s2384_s22  ;;  %p2388_p8 = scmp.lt.u32.totalorder %s2384_s22, %s2746_s3 }
  0x30   :  { %p2390_p9 = pnand %p2388_p8, %p2385_p7 }
  0x32   :  { %2393 = shalt.err (!%p2390_p9)
}
  0x33   :  { %s2394_s27 = scalar_lea.vmem %s53_s10, 16  ;;  %s2398_s29 = scalar_lea.vmem %s53_s10, 32 }
  0x34   :  { %p2395_p10 = scmp.ne.s32.totalorder %s53_s10, %s2394_s27  ;;  %p2399_p11 = scmp.lt.s32.totalorder %s53_s10, %s53_s10 }
  0x35   :  { %p2400_p12 = scmp.lt.s32.totalorder %s2398_s29, %s2394_s27 }
  0x37   :  { %p2401_p13 = por %p2400_p12, %p2399_p11 }
  0x39   :  { %p2402_p0 = pnand %p2401_p13, %p2395_p10 }
  0x3b   :  { %2405 = shalt.err (!%p2402_p0)
}
  0x3c   :  { %55 = dma.hbm_to_vmem [thread:$0]  %s2746_s3, 16, %s53_s10, [#allocation7]  }
  0x3d   :  { %2406 = dma.done.wait [#allocation4], 32  }
  0x3e   :  { %2407 = vsyncadd [#allocation4], 4294967264 }
  0x3f   :  { %2408 = dma.done.wait [#allocation3], 4992  }
  0x40   :  { %2409 = vsyncadd [#allocation3], 4294962304 }
  0x41   :  { %2410 = dma.done.wait [#allocation7], 1552  }
  0x42   :  { %2411 = vsyncadd [#allocation7], 4294965744 }
  0x43   :  { %68 = sfence }
  0x44   :  { %v511_v0 = vld [vmem:[#allocation6 + $0x8] sm:$0xff]  ;;  %v514_v1 = vld [vmem:[#allocation6 + $0x20] sm:$0xff]  ;;  %v513_v4 = vld [vmem:[#allocation6 + $0x18] sm:$0xff]  ;;  %v2418_v7 = vmov 0.0   ;;  %v2419_v8 = vmov 0.0|0.0   ;;  %vm2420_vm0 = vmmov 0   ;;  %v90_v20 = vlaneseq }
  0x45   :  { %v510_v2 = vld [vmem:[#allocation6] sm:$0xff]  ;;  %v2491_v3 = vpack.c.bf16 %v514_v1, %v511_v0  ;;  %v517_v5 = vld [vmem:[#allocation6 + $0x38] sm:$0xff]  ;;  %v520_v6 = vld [vmem:[#allocation6 + $0x50] sm:$0xff]  ;;  %597 = vmatprep.mubr.f32.mxu0 %v2418_v7  ;;  %2135 = vmatprep.subr.bf16.mxu1 %v2419_v8  ;;  %s69_s3 = sld [smem:[#allocation2]]  ;;  %vm121_vm1 = vcmask 1040384   ;;  %vm529_vm2 = vcmask 261120  }
  0x46   :  { %v2495_v9 = vpack.c.bf16 %v513_v4, %v510_v2  ;;  %v2497_v10 = vpack.c.bf16 %v520_v6, %v517_v5  ;;  %v516_v11 = vld [vmem:[#allocation6 + $0x30] sm:$0xff]  ;;  %v519_v12 = vld [vmem:[#allocation6 + $0x48] sm:$0xff]  ;;  %2047 = vmatprep.mubr.msk.f32.mxu1 %vm2420_vm0, %v2418_v7  ;;  %v518_v15 = vld [vmem:[#allocation6 + $0x40] sm:$0xff]  ;;  %s1938_s28 = sld [smem:[#allocation2 + $0x80]]  ;;  %v91_v21 = vshrl.u32 %v90_v20, 7  ;;  %s1940_s2 = sld [smem:[#allocation2 + $0x1]] }
  0x47   :  { %v512_v13 = vld [vmem:[#allocation6 + $0x10] sm:$0xff]  ;;  %2128 = vmatprep.subr.bf16.mxu0 %v2491_v3  ;;  %v515_v14 = vld [vmem:[#allocation6 + $0x28] sm:$0xff]  ;;  %v521_v16 = vld [vmem:[#allocation6 + $0x58] sm:$0xff]  ;;  %v2503_v17 = vpack.c.bf16 %v519_v12, %v516_v11  ;;  %s1942_s14 = sld [smem:[#allocation2 + $0x81]]  ;;  %s1944_s25 = sld [smem:[#allocation2 + $0x2]]  ;;  %vm1871_vm3 = vcmask 1041408  }
  0x48   :  { %2130 = vmatpush1.bf16.msra.mxu0 %v2495_v9  ;;  %v2505_v18 = vpack.c.bf16 %v515_v14, %v512_v13  ;;  %v2509_v19 = vpack.c.bf16 %v521_v16, %v518_v15  ;;  %v2529_v22 = vsub.s32 0, %v91_v21  ;;  %v2531_v25 = vsub.s32 1, %v91_v21  ;;  %v2541_v44 = vld [vmem:[#allocation8] ss:$0 sm:$0xff]  ;;  %s1946_s26 = sld [smem:[#allocation2 + $0x82]] }
  0x49   :  { %2132 = vmatprep.subr.bf16.mxu0 %v2497_v10  ;;  %v2539_v42 = vsub.s32 2, %v91_v21  ;;  %vm1873_vm4 = vcmask 1043456   ;;  %vm1875_vm5 = vcmask 1045504  }
  0x4a   :  { %2137 = vmatpush3.bf16.msra.mxu1 %v2505_v18 }
  0x4b   :  { %2138 = vmatprep.subr.bf16.mxu1 %v2419_v8  ;;  %s70_s30 = sshra.s32 %s69_s3, 3  ;;  %s73_s8 = sand.u32 7, %s69_s3 }
  0x4c   :  { %2134 = vmatpush1.bf16.msra.mxu0 %v2503_v17  ;;  %s80_s5 = sshra.s32 %s1938_s28, 3  ;;  %s1937_s6 = smul.u32 24, %s70_s30 }
  0x4d   :  { %2142 = vmatprep.subr.bf16.mxu0 %v2491_v3  ;;  %s1939_s7 = smul.u32 24, %s80_s5  ;;  %s83_s9 = sand.u32 7, %s1938_s28 }
  0x4e   :  { %2140 = vmatpush3.bf16.msra.mxu1 %v2509_v19  ;;  %s76_s10 = sadd.s32 %s1937_s6, %s73_s8  ;;  %s126_s15 = sshra.s32 %s1940_s2, 3 }
  0x4f   :  { %598 = vmatmul.mubr.f32.vlgmr.msra.gmra.mrb[0].mxu0 %v2418_v7  ;;  %2149 = vmatprep.subr.bf16.mxu1 %v2419_v8  ;;  %s86_s11 = sadd.s32 %s1939_s7, %s83_s9  ;;  %s77_s12 = scalar_lea.vmem [#allocation5], %s76_s10 }
  0x50   :  { %2144 = vmatpush1.bf16.msra.mxu0 %v2495_v9  ;;  %763 = vmatprep.mubr.f32.mxu0 %v2418_v7  ;;  %v78_v23 = vld [vmem:[%s77_s12] ss:$8 sm:$0x7]  ;;  %s87_s13 = scalar_lea.vmem [#allocation5], %s86_s11  ;;  %s136_s16 = sshra.s32 %s1942_s14, 3 }
  0x51   :  { %2048 = vmatmul.mubr.f32.vlgmr.msra.gmra.mrb[0].mxu1 %v2418_v7  ;;  %2146 = vmatprep.subr.bf16.mxu0 %v2497_v10  ;;  %v88_v24 = vld [vmem:[%s87_s13] ss:$8 sm:$0x7]  ;;  %v93_v26 = vrot.slane %v78_v23, %v2529_v22  ;;  %v97_v28 = vrot.slane %v78_v23, %v2531_v25  ;;  %v101_v45 = vrot.slane %v78_v23, %v2539_v42  ;;  %s1941_s17 = smul.u32 24, %s126_s15  ;;  %s129_s19 = sand.u32 7, %s1940_s2 }
  0x52   :  { %2151 = vmatpush3.bf16.msra.mxu1 %v2505_v18  ;;  %2058 = vmatprep.mubr.msk.f32.mxu1 %vm2420_vm0, %v2418_v7  ;;  %v109_v27 = vrot.slane %v88_v24, %v2529_v22  ;;  %v113_v29 = vrot.slane %v88_v24, %v2531_v25  ;;  %v117_v46 = vrot.slane %v88_v24, %v2539_v42  ;;  %s1943_s18 = smul.u32 24, %s136_s16  ;;  %s139_s20 = sand.u32 7, %s1942_s14 }
  0x53   :  { %2152 = vmatprep.subr.bf16.mxu1 %v2419_v8  ;;  %s132_s21 = sadd.s32 %s1941_s17, %s129_s19  ;;  %s181_s27 = sshra.s32 %s1944_s25, 3 }
  0x54   :  { %2148 = vmatpush1.bf16.msra.mxu0 %v2503_v17  ;;  %v122_v30 = vsel %vm121_vm1, %v93_v26, %v109_v27  ;;  %v123_v33 = vsel %vm121_vm1, %v97_v28, %v113_v29  ;;  %v124_v50 = vsel %vm121_vm1, %v101_v45, %v117_v46  ;;  %s142_s22 = sadd.s32 %s1943_s18, %s139_s20  ;;  %s133_s23 = scalar_lea.vmem [#allocation5], %s132_s21 }
  0x55   :  { %2156 = vmatprep.subr.bf16.mxu0 %v2491_v3  ;;  %v134_v59 = vld [vmem:[%s133_s23] ss:$8 sm:$0x7]  ;;  %s143_s24 = scalar_lea.vmem [#allocation5], %s142_s22  ;;  %s191_s29 = sshra.s32 %s1946_s26, 3 }
  0x56   :  { %2154 = vmatpush3.bf16.msra.mxu1 %v2509_v19  ;;  %v144_v60 = vld [vmem:[%s143_s24] ss:$8 sm:$0x7]  ;;  %v149_v61 = vrot.slane %v134_v59, %v2529_v22  ;;  %v153_v63 = vrot.slane %v134_v59, %v2531_v25  ;;  %v157_v23 = vrot.slane %v134_v59, %v2539_v42  ;;  %s1945_s1 = smul.u32 24, %s181_s27  ;;  %s184_s3 = sand.u32 7, %s1944_s25 }
  0x57   :  { %2163 = vmatprep.subr.bf16.mxu1 %v2419_v8  ;;  %v165_v62 = vrot.slane %v144_v60, %v2529_v22  ;;  %v169_v0 = vrot.slane %v144_v60, %v2531_v25  ;;  %v173_v24 = vrot.slane %v144_v60, %v2539_v42  ;;  %s1947_s0 = smul.u32 24, %s191_s29  ;;  %s194_s28 = sand.u32 7, %s1946_s26 }
  0x58   :  { %s187_s30 = sadd.s32 %s1945_s1, %s184_s3  ;;  %s1948_s8 = sld [smem:[#allocation2 + $0x3]] }
  0x59   :  { %v177_v1 = vsel %vm121_vm1, %v149_v61, %v165_v62  ;;  %v178_v6 = vsel %vm121_vm1, %v153_v63, %v169_v0  ;;  %v179_v29 = vsel %vm121_vm1, %v157_v23, %v173_v24  ;;  %s197_s5 = sadd.s32 %s1947_s0, %s194_s28  ;;  %s188_s6 = scalar_lea.vmem [#allocation5], %s187_s30 }
  0x5a   :  { %s198_s7 = scalar_lea.vmem [#allocation5], %s197_s5  ;;  %s1950_s9 = sld [smem:[#allocation2 + $0x83]] }
  0x5b   :  { %s1952_s21 = sld [smem:[#allocation2 + $0x4]]  ;;  %s1956_s30 = sld [smem:[#allocation2 + $0x5]] }
  0x5c   :  { %s1954_s22 = sld [smem:[#allocation2 + $0x84]]  ;;  %s1958_s5 = sld [smem:[#allocation2 + $0x85]] }
  0x5e   :  { %s236_s10 = sshra.s32 %s1948_s8, 3  ;;  %s239_s2 = sand.u32 7, %s1948_s8 }
  0x5f   :  { %s1949_s12 = smul.u32 24, %s236_s10 }
  0x60   :  { %s246_s11 = sshra.s32 %s1950_s9, 3  ;;  %s249_s14 = sand.u32 7, %s1950_s9 }
  0x61   :  { %s1951_s13 = smul.u32 24, %s246_s11  ;;  %s242_s15 = sadd.s32 %s1949_s12, %s239_s2 }
  0x62   :  { %s243_s17 = scalar_lea.vmem [#allocation5], %s242_s15  ;;  %s291_s23 = sshra.s32 %s1952_s21, 3 }
  0x63   :  { %s252_s16 = sadd.s32 %s1951_s13, %s249_s14  ;;  %s301_s24 = sshra.s32 %s1954_s22, 3 }
  0x64   :  { %s253_s18 = scalar_lea.vmem [#allocation5], %s252_s16  ;;  %s1953_s25 = smul.u32 24, %s291_s23 }
  0x65   :  { %s1955_s26 = smul.u32 24, %s301_s24  ;;  %s294_s27 = sand.u32 7, %s1952_s21 }
  0x66   :  { %s304_s29 = sand.u32 7, %s1954_s22  ;;  %s297_s1 = sadd.s32 %s1953_s25, %s294_s27 }
  0x67   :  { %s307_s0 = sadd.s32 %s1955_s26, %s304_s29  ;;  %s298_s3 = scalar_lea.vmem [#allocation5], %s297_s1 }
  0x68   :  { %s308_s28 = scalar_lea.vmem [#allocation5], %s307_s0  ;;  %s349_s10 = sand.u32 7, %s1956_s30 }
  0x69   :  { %s359_s11 = sand.u32 7, %s1958_s5  ;;  %s1960_s15 = sld [smem:[#allocation2 + $0x6]] }
  0x6a   :  { %s1962_s16 = sld [smem:[#allocation2 + $0x86]]  ;;  %s1964_s27 = sld [smem:[#allocation2 + $0x7]] }
  0x6b   :  { %s1966_s29 = sld [smem:[#allocation2 + $0x87]] }
  0x6f   :  { %s404_s21 = sand.u32 7, %s1960_s15 }
  0x70   :  { %s414_s22 = sand.u32 7, %s1962_s16  ;;  %s456_s1 = sshra.s32 %s1964_s27, 3 }
  0x71   :  { %s466_s0 = sshra.s32 %s1966_s29, 3 }
 0x122   :  { %v599_v31 = vpop.f32.mrb[0].mxu0 }
 0x123   :  { %v674_v32 = vadd.f32 %v599_v31, %v122_v30  ;;  %v601_v34 = vpop.f32.mrb[1].mxu0 }
 0x124   :  { %v670_v35 = vpop.f32.mrb[0].mxu1  ;;  %v681_v38 = vadd.f32 %v601_v34, %v123_v33 }
 0x125   :  { %v1969_v36 = vmul.f32 -1.442695, %v674_v32  ;;  %v2049_v37 = vpop.f32.mrb[1].mxu1  ;;  %v688_v48 = vadd.f32 %v2541_v44, %v670_v35 }
 0x126   :  { %v1970_v39 = vmul.f32 -1.442695, %v681_v38  ;;  %v189_v38 = vld [vmem:[%s188_s6] ss:$8 sm:$0x7]  ;;  %s346_s6 = sshra.s32 %s1956_s30, 3 }
 0x127   :  { %2248 = vpow2.f32 %v1969_v36  ;;  %v212_v60 = vrot.slane %v189_v38, %v2539_v42  ;;  %s1957_s8 = smul.u32 24, %s346_s6  ;;  %s459_s30 = sand.u32 7, %s1964_s27 }
 0x128   :  { %2250 = vpow2.f32 %v1970_v39  ;;  %v199_v39 = vld [vmem:[%s198_s7] ss:$8 sm:$0x7]  ;;  %s356_s7 = sshra.s32 %s1958_s5, 3  ;;  %s469_s5 = sand.u32 7, %s1966_s29 }
 0x129   :  { %v224_v45 = vrot.slane %v199_v39, %v2531_v25  ;;  %v228_v61 = vrot.slane %v199_v39, %v2539_v42  ;;  %s1959_s9 = smul.u32 24, %s356_s7  ;;  %s352_s12 = sadd.s32 %s1957_s8, %s349_s10 }
 0x12a   :  { %s353_s2 = scalar_lea.vmem [#allocation5], %s352_s12 }
 0x12b   :  { %s362_s13 = sadd.s32 %s1959_s9, %s359_s11 }
 0x12c   :  { %s363_s14 = scalar_lea.vmem [#allocation5], %s362_s13 }
 0x131   :  { %v2249_v40 = vpop.eup %2248 }
 0x132   :  { %v678_v41 = vadd.f32 1.0, %v2249_v40  ;;  %v2251_v43 = vpop.eup %2250  ;;  %v204_v40 = vrot.slane %v189_v38, %v2529_v22 }
 0x133   :  { %v685_v47 = vadd.f32 1.0, %v2251_v43  ;;  %v208_v43 = vrot.slane %v189_v38, %v2531_v25 }
 0x134   :  { %2252 = vrcp.f32 %v678_v41  ;;  %v220_v41 = vrot.slane %v199_v39, %v2529_v22 }
 0x135   :  { %2254 = vrcp.f32 %v685_v47 }
 0x136   :  { %v232_v46 = vsel %vm121_vm1, %v204_v40, %v220_v41 }
 0x13e   :  { %v2253_v49 = vpop.eup %2252 }
 0x13f   :  { %v689_v51 = vmul.f32 %v2253_v49, %v688_v48  ;;  %v2255_v53 = vpop.eup %2254 }
 0x140   :  { %v692_v54 = vsub.f32 1.0, %v2255_v53  ;;  %v694_v57 = vmul.f32 0.0, %v2255_v53 }
 0x141   :  { %v690_v52 = vadd.f32 %v689_v51, %v124_v50  ;;  %v233_v50 = vsel %vm121_vm1, %v208_v43, %v224_v45 }
 0x143   :  { %2256 = vtanh.f32 %v690_v52 }
 0x14d   :  { %v2257_v55 = vpop.eup %2256 }
 0x14e   :  { %v693_v56 = vmul.f32 %v2257_v55, %v692_v54 }
 0x150   :  { %v2547_v58 = vadd.f32 %v694_v57, %v693_v56 }
 0x152   :  { %1971 = vmatmul.mubr.msk.f32.vlgmr.msra.gmra.mrb[2].mxu0 %vm529_vm2, %v2547_v58  ;;  %2059 = vmatmul.mubr.msk.f32.vlgmr.msra.gmra.mrb[2].mxu1 %vm529_vm2, %v2547_v58 }
 0x153   :  { %2158 = vmatpush1.bf16.msra.mxu0 %v2495_v9  ;;  %2165 = vmatpush3.bf16.msra.mxu1 %v2505_v18 }
 0x154   :  { %2160 = vmatprep.subr.bf16.mxu0 %v2497_v10  ;;  %2166 = vmatprep.subr.bf16.mxu1 %v2419_v8 }
 0x155   :  { %929 = vmatprep.mubr.f32.mxu0 %v2418_v7  ;;  %2069 = vmatprep.mubr.msk.f32.mxu1 %vm2420_vm0, %v2418_v7 }
 0x157   :  { %2162 = vmatpush1.bf16.msra.mxu0 %v2503_v17  ;;  %2168 = vmatpush3.bf16.msra.mxu1 %v2509_v19 }
 0x158   :  { %2170 = vmatprep.subr.bf16.mxu0 %v2491_v3  ;;  %2177 = vmatprep.subr.bf16.mxu1 %v2419_v8 }
 0x225   :  { %v765_v2 = vpop.f32.mrb[2].mxu0  ;;  %v836_v4 = vpop.f32.mrb[2].mxu1 }
 0x226   :  { %v840_v5 = vadd.f32 %v765_v2, %v177_v1  ;;  %v767_v11 = vpop.f32.mrb[3].mxu0  ;;  %v2060_v12 = vpop.f32.mrb[3].mxu1  ;;  %v854_v27 = vadd.f32 %v2541_v44, %v836_v4  ;;  %v234_v1 = vsel %vm121_vm1, %v212_v60, %v228_v61 }
 0x227   :  { %v847_v14 = vadd.f32 %v767_v11, %v178_v6 }
 0x228   :  { %v1973_v13 = vmul.f32 -1.442695, %v840_v5 }
 0x229   :  { %v1974_v15 = vmul.f32 -1.442695, %v847_v14 }
 0x22a   :  { %2258 = vpow2.f32 %v1973_v13 }
 0x22b   :  { %2260 = vpow2.f32 %v1974_v15  ;;  %v244_v15 = vld [vmem:[%s243_s17] ss:$8 sm:$0x7]  ;;  %s401_s17 = sshra.s32 %s1960_s15, 3 }
 0x22c   :  { %v263_v23 = vrot.slane %v244_v15, %v2531_v25  ;;  %v267_v40 = vrot.slane %v244_v15, %v2539_v42  ;;  %s1961_s19 = smul.u32 24, %s401_s17 }
 0x22e   :  { %s407_s23 = sadd.s32 %s1961_s19, %s404_s21 }
 0x22f   :  { %s408_s25 = scalar_lea.vmem [#allocation5], %s407_s23 }
 0x234   :  { %v2259_v16 = vpop.eup %2258 }
 0x235   :  { %v844_v20 = vadd.f32 1.0, %v2259_v16  ;;  %v2261_v21 = vpop.eup %2260  ;;  %v254_v16 = vld [vmem:[%s253_s18] ss:$8 sm:$0x7]  ;;  %s411_s18 = sshra.s32 %s1962_s16, 3 }
 0x236   :  { %v851_v26 = vadd.f32 1.0, %v2261_v21  ;;  %v275_v21 = vrot.slane %v254_v16, %v2529_v22  ;;  %v279_v24 = vrot.slane %v254_v16, %v2531_v25  ;;  %v283_v41 = vrot.slane %v254_v16, %v2539_v42  ;;  %s1963_s20 = smul.u32 24, %s411_s18 }
 0x237   :  { %2262 = vrcp.f32 %v844_v20  ;;  %v259_v20 = vrot.slane %v244_v15, %v2529_v22 }
 0x238   :  { %2264 = vrcp.f32 %v851_v26  ;;  %s417_s24 = sadd.s32 %s1963_s20, %s414_s22 }
 0x239   :  { %v287_v26 = vsel %vm121_vm1, %v259_v20, %v275_v21  ;;  %s418_s26 = scalar_lea.vmem [#allocation5], %s417_s24 }
 0x241   :  { %v2263_v28 = vpop.eup %2262 }
 0x242   :  { %v855_v30 = vmul.f32 %v2263_v28, %v854_v27  ;;  %v2265_v32 = vpop.eup %2264 }
 0x243   :  { %v858_v33 = vsub.f32 1.0, %v2265_v32  ;;  %v860_v36 = vmul.f32 %v2265_v32, %v2547_v58 }
 0x244   :  { %v856_v31 = vadd.f32 %v855_v30, %v179_v29  ;;  %v288_v30 = vsel %vm121_vm1, %v263_v23, %v279_v24 }
 0x246   :  { %2266 = vtanh.f32 %v856_v31 }
 0x250   :  { %v2267_v34 = vpop.eup %2266 }
 0x251   :  { %v859_v35 = vmul.f32 %v2267_v34, %v858_v33 }
 0x253   :  { %v2575_v37 = vadd.f32 %v860_v36, %v859_v35 }
 0x255   :  { %1975 = vmatmul.mubr.msk.f32.vlgmr.msra.gmra.mrb[4].mxu0 %vm529_vm2, %v2575_v37  ;;  %2070 = vmatmul.mubr.msk.f32.vlgmr.msra.gmra.mrb[4].mxu1 %vm529_vm2, %v2575_v37 }
 0x256   :  { %2172 = vmatpush1.bf16.msra.mxu0 %v2495_v9  ;;  %2179 = vmatpush3.bf16.msra.mxu1 %v2505_v18 }
 0x257   :  { %2174 = vmatprep.subr.bf16.mxu0 %v2497_v10  ;;  %2180 = vmatprep.subr.bf16.mxu1 %v2419_v8 }
 0x258   :  { %1095 = vmatprep.mubr.f32.mxu0 %v2418_v7  ;;  %2080 = vmatprep.mubr.msk.f32.mxu1 %vm2420_vm0, %v2418_v7 }
 0x25a   :  { %2176 = vmatpush1.bf16.msra.mxu0 %v2503_v17  ;;  %2182 = vmatpush3.bf16.msra.mxu1 %v2509_v19 }
 0x25b   :  { %2184 = vmatprep.subr.bf16.mxu0 %v2491_v3  ;;  %2191 = vmatprep.subr.bf16.mxu1 %v2419_v8 }
 0x328   :  { %v931_v47 = vpop.f32.mrb[4].mxu0  ;;  %v1002_v48 = vpop.f32.mrb[4].mxu1 }
 0x329   :  { %v1006_v49 = vadd.f32 %v931_v47, %v232_v46  ;;  %v933_v51 = vpop.f32.mrb[5].mxu0  ;;  %v2071_v52 = vpop.f32.mrb[5].mxu1  ;;  %v1020_v63 = vadd.f32 %v2541_v44, %v1002_v48  ;;  %v289_v47 = vsel %vm121_vm1, %v267_v40, %v283_v41  ;;  %v354_v41 = vld [vmem:[%s353_s2] ss:$8 sm:$0x7] }
 0x32a   :  { %v1013_v54 = vadd.f32 %v933_v51, %v233_v50 }
 0x32b   :  { %v1977_v53 = vmul.f32 -1.442695, %v1006_v49 }
 0x32c   :  { %v1978_v55 = vmul.f32 -1.442695, %v1013_v54 }
 0x32d   :  { %2268 = vpow2.f32 %v1977_v53  ;;  %v1858_v53 = vrot.slane %v2575_v37, 6 }
 0x32e   :  { %2270 = vpow2.f32 %v1978_v55 }
 0x337   :  { %v2269_v56 = vpop.eup %2268 }
 0x338   :  { %v1010_v57 = vadd.f32 1.0, %v2269_v56  ;;  %v2271_v59 = vpop.eup %2270 }
 0x339   :  { %v1017_v62 = vadd.f32 1.0, %v2271_v59  ;;  %v1872_v59 = vsel %vm1871_vm3, %v2547_v58, %v1858_v53  ;;  %v299_v58 = vld [vmem:[%s298_s3] ss:$8 sm:$0x7]  ;;  %s1965_s3 = smul.u32 24, %s456_s1 }
 0x33a   :  { %2272 = vrcp.f32 %v1010_v57 }
 0x33b   :  { %2274 = vrcp.f32 %v1017_v62  ;;  %v309_v62 = vld [vmem:[%s308_s28] ss:$8 sm:$0x7]  ;;  %s1967_s28 = smul.u32 24, %s466_s0  ;;  %s462_s6 = sadd.s32 %s1965_s3, %s459_s30 }
 0x33c   :  { %s463_s8 = scalar_lea.vmem [#allocation5], %s462_s6 }
 0x33d   :  { %s472_s7 = sadd.s32 %s1967_s28, %s469_s5 }
 0x33e   :  { %s473_s9 = scalar_lea.vmem [#allocation5], %s472_s7 }
 0x344   :  { %v2273_v0 = vpop.eup %2272 }
 0x345   :  { %v1021_v2 = vmul.f32 %v2273_v0, %v1020_v63  ;;  %v2275_v5 = vpop.eup %2274  ;;  %v314_v63 = vrot.slane %v299_v58, %v2529_v22  ;;  %v330_v0 = vrot.slane %v309_v62, %v2529_v22 }
 0x346   :  { %v1024_v6 = vsub.f32 1.0, %v2275_v5  ;;  %v1026_v13 = vmul.f32 %v2275_v5, %v2575_v37 }
 0x347   :  { %v1022_v4 = vadd.f32 %v1021_v2, %v234_v1  ;;  %v318_v1 = vrot.slane %v299_v58, %v2531_v25  ;;  %v334_v2 = vrot.slane %v309_v62, %v2531_v25 }
 0x349   :  { %2276 = vtanh.f32 %v1022_v4  ;;  %v342_v4 = vsel %vm121_vm1, %v314_v63, %v330_v0 }
 0x353   :  { %v2277_v11 = vpop.eup %2276 }
 0x354   :  { %v1025_v12 = vmul.f32 %v2277_v11, %v1024_v6 }
 0x356   :  { %v2603_v14 = vadd.f32 %v1026_v13, %v1025_v12  ;;  %v343_v12 = vsel %vm121_vm1, %v318_v1, %v334_v2 }
 0x358   :  { %1979 = vmatmul.mubr.msk.f32.vlgmr.msra.gmra.mrb[6].mxu0 %vm529_vm2, %v2603_v14  ;;  %2081 = vmatmul.mubr.msk.f32.vlgmr.msra.gmra.mrb[6].mxu1 %vm529_vm2, %v2603_v14  ;;  %v1860_v56 = vrot.slane %v2603_v14, 4 }
 0x359   :  { %2186 = vmatpush1.bf16.msra.mxu0 %v2495_v9  ;;  %2193 = vmatpush3.bf16.msra.mxu1 %v2505_v18 }
 0x35a   :  { %2188 = vmatprep.subr.bf16.mxu0 %v2497_v10  ;;  %2194 = vmatprep.subr.bf16.mxu1 %v2419_v8  ;;  %v1874_v37 = vsel %vm1873_vm4, %v1872_v59, %v1860_v56 }
 0x35b   :  { %1261 = vmatprep.mubr.f32.mxu0 %v2418_v7  ;;  %2091 = vmatprep.mubr.msk.f32.mxu1 %vm2420_vm0, %v2418_v7 }
 0x35d   :  { %2190 = vmatpush1.bf16.msra.mxu0 %v2503_v17  ;;  %2196 = vmatpush3.bf16.msra.mxu1 %v2509_v19 }
 0x35e   :  { %2198 = vmatprep.subr.bf16.mxu0 %v2491_v3  ;;  %2205 = vmatprep.subr.bf16.mxu1 %v2419_v8 }
 0x42b   :  { %v1097_v27 = vpop.f32.mrb[6].mxu0  ;;  %v1168_v28 = vpop.f32.mrb[6].mxu1 }
 0x42c   :  { %v1172_v29 = vadd.f32 %v1097_v27, %v287_v26  ;;  %v1099_v31 = vpop.f32.mrb[7].mxu0  ;;  %v2082_v32 = vpop.f32.mrb[7].mxu1  ;;  %v1186_v45 = vadd.f32 %v2541_v44, %v1168_v28  ;;  %v322_v26 = vrot.slane %v299_v58, %v2539_v42  ;;  %v338_v27 = vrot.slane %v309_v62, %v2539_v42 }
 0x42d   :  { %v1179_v34 = vadd.f32 %v1099_v31, %v288_v30 }
 0x42e   :  { %v1981_v33 = vmul.f32 -1.442695, %v1172_v29  ;;  %v344_v31 = vsel %vm121_vm1, %v322_v26, %v338_v27 }
 0x42f   :  { %v1982_v35 = vmul.f32 -1.442695, %v1179_v34 }
 0x430   :  { %2278 = vpow2.f32 %v1981_v33 }
 0x431   :  { %2280 = vpow2.f32 %v1982_v35 }
 0x43a   :  { %v2279_v36 = vpop.eup %2278 }
 0x43b   :  { %v1176_v38 = vadd.f32 1.0, %v2279_v36  ;;  %v2281_v39 = vpop.eup %2280 }
 0x43c   :  { %v1183_v43 = vadd.f32 1.0, %v2281_v39 }
 0x43d   :  { %2282 = vrcp.f32 %v1176_v38 }
 0x43e   :  { %2284 = vrcp.f32 %v1183_v43  ;;  %v364_v43 = vld [vmem:[%s363_s14] ss:$8 sm:$0x7] }
 0x43f   :  { %v393_v58 = vrot.slane %v364_v43, %v2539_v42 }
 0x447   :  { %v2283_v46 = vpop.eup %2282 }
 0x448   :  { %v1187_v48 = vmul.f32 %v2283_v46, %v1186_v45  ;;  %v2285_v50 = vpop.eup %2284  ;;  %v369_v45 = vrot.slane %v354_v41, %v2529_v22  ;;  %v373_v46 = vrot.slane %v354_v41, %v2531_v25 }
 0x449   :  { %v1190_v51 = vsub.f32 1.0, %v2285_v50  ;;  %v1192_v55 = vmul.f32 %v2285_v50, %v2603_v14 }
 0x44a   :  { %v1188_v49 = vadd.f32 %v1187_v48, %v289_v47  ;;  %v389_v47 = vrot.slane %v364_v43, %v2531_v25 }
 0x44c   :  { %2286 = vtanh.f32 %v1188_v49 }
 0x456   :  { %v2287_v52 = vpop.eup %2286 }
 0x457   :  { %v1191_v54 = vmul.f32 %v2287_v52, %v1190_v51  ;;  %v398_v52 = vsel %vm121_vm1, %v373_v46, %v389_v47 }
 0x459   :  { %v2633_v57 = vadd.f32 %v1192_v55, %v1191_v54 }
 0x45b   :  { %1983 = vmatmul.mubr.msk.f32.vlgmr.msra.gmra.mrb[8].mxu0 %vm529_vm2, %v2633_v57  ;;  %v1862_v60 = vrot.slane %v2633_v57, 2  ;;  %2092 = vmatmul.mubr.msk.f32.vlgmr.msra.gmra.mrb[8].mxu1 %vm529_vm2, %v2633_v57 }
 0x45c   :  { %2200 = vmatpush1.bf16.msra.mxu0 %v2495_v9  ;;  %2207 = vmatpush3.bf16.msra.mxu1 %v2505_v18 }
 0x45d   :  { %v1876_v61 = vsel %vm1875_vm5, %v1874_v37, %v1862_v60  ;;  %2202 = vmatprep.subr.bf16.mxu0 %v2497_v10  ;;  %2208 = vmatprep.subr.bf16.mxu1 %v2419_v8 }
 0x45e   :  { %1880 = vst [vmem:[%s2747_s4] sm:$0xff] %v1876_v61  ;;  %1427 = vmatprep.mubr.f32.mxu0 %v2418_v7  ;;  %2102 = vmatprep.mubr.msk.f32.mxu1 %vm2420_vm0, %v2418_v7  ;;  %v377_v61 = vrot.slane %v354_v41, %v2539_v42 }
 0x460   :  { %2204 = vmatpush1.bf16.msra.mxu0 %v2503_v17  ;;  %2210 = vmatpush3.bf16.msra.mxu1 %v2509_v19  ;;  %v399_v1 = vsel %vm121_vm1, %v377_v61, %v393_v58 }
 0x461   :  { %2212 = vmatprep.subr.bf16.mxu0 %v2491_v3  ;;  %2219 = vmatprep.subr.bf16.mxu1 %v2419_v8 }
 0x52e   :  { %v1263_v5 = vpop.f32.mrb[8].mxu0  ;;  %v1334_v6 = vpop.f32.mrb[8].mxu1 }
 0x52f   :  { %v1338_v11 = vadd.f32 %v1263_v5, %v342_v4  ;;  %v1265_v13 = vpop.f32.mrb[9].mxu0  ;;  %v2093_v14 = vpop.f32.mrb[9].mxu1  ;;  %v1352_v29 = vadd.f32 %v2541_v44, %v1334_v6 }
 0x530   :  { %v1345_v16 = vadd.f32 %v1265_v13, %v343_v12 }
 0x531   :  { %v1985_v15 = vmul.f32 -1.442695, %v1338_v11 }
 0x532   :  { %v1986_v20 = vmul.f32 -1.442695, %v1345_v16 }
 0x533   :  { %2288 = vpow2.f32 %v1985_v15 }
 0x534   :  { %2290 = vpow2.f32 %v1986_v20 }
 0x53d   :  { %v2289_v21 = vpop.eup %2288 }
 0x53e   :  { %v1342_v23 = vadd.f32 1.0, %v2289_v21  ;;  %v2291_v24 = vpop.eup %2290 }
 0x53f   :  { %v1349_v28 = vadd.f32 1.0, %v2291_v24 }
 0x540   :  { %2292 = vrcp.f32 %v1342_v23 }
 0x541   :  { %2294 = vrcp.f32 %v1349_v28 }
 0x54a   :  { %v2293_v30 = vpop.eup %2292 }
 0x54b   :  { %v1353_v32 = vmul.f32 %v2293_v30, %v1352_v29  ;;  %v2295_v34 = vpop.eup %2294 }
 0x54c   :  { %v1356_v35 = vsub.f32 1.0, %v2295_v34  ;;  %v1358_v39 = vmul.f32 %v2295_v34, %v2633_v57 }
 0x54d   :  { %v1354_v33 = vadd.f32 %v1353_v32, %v344_v31 }
 0x54f   :  { %2296 = vtanh.f32 %v1354_v33 }
 0x559   :  { %v2297_v36 = vpop.eup %2296 }
 0x55a   :  { %v1357_v38 = vmul.f32 %v2297_v36, %v1356_v35 }
 0x55c   :  { %v2669_v40 = vadd.f32 %v1358_v39, %v1357_v38 }
 0x55e   :  { %1987 = vmatmul.mubr.msk.f32.vlgmr.msra.gmra.mrb[10].mxu0 %vm529_vm2, %v2669_v40  ;;  %2103 = vmatmul.mubr.msk.f32.vlgmr.msra.gmra.mrb[10].mxu1 %vm529_vm2, %v2669_v40 }
 0x55f   :  { %2214 = vmatpush1.bf16.msra.mxu0 %v2495_v9  ;;  %2221 = vmatpush3.bf16.msra.mxu1 %v2505_v18 }
 0x560   :  { %2216 = vmatprep.subr.bf16.mxu0 %v2497_v10  ;;  %2222 = vmatprep.subr.bf16.mxu1 %v2419_v8 }
 0x561   :  { %1593 = vmatprep.mubr.f32.mxu0 %v2418_v7  ;;  %2113 = vmatprep.mubr.msk.f32.mxu1 %vm2420_vm0, %v2418_v7 }
 0x563   :  { %2218 = vmatpush1.bf16.msra.mxu0 %v2503_v17  ;;  %2224 = vmatpush3.bf16.msra.mxu1 %v2509_v19 }
 0x564   :  { %2226 = vmatprep.subr.bf16.mxu0 %v2491_v3  ;;  %2233 = vmatprep.subr.bf16.mxu1 %v2419_v8  ;;  %v385_v3 = vrot.slane %v364_v43, %v2529_v22 }
 0x566   :  { %v397_v48 = vsel %vm121_vm1, %v369_v45, %v385_v3 }
 0x631   :  { %v1429_v49 = vpop.f32.mrb[10].mxu0  ;;  %v1500_v50 = vpop.f32.mrb[10].mxu1 }
 0x632   :  { %v1504_v51 = vadd.f32 %v1429_v49, %v397_v48  ;;  %v1431_v53 = vpop.f32.mrb[11].mxu0  ;;  %v2104_v54 = vpop.f32.mrb[11].mxu1  ;;  %v1518_v63 = vadd.f32 %v2541_v44, %v1500_v50  ;;  %v464_v49 = vld [vmem:[%s463_s8] ss:$8 sm:$0x7] }
 0x633   :  { %v1511_v56 = vadd.f32 %v1431_v53, %v398_v52  ;;  %v474_v50 = vld [vmem:[%s473_s9] ss:$8 sm:$0x7]  ;;  %v483_v53 = vrot.slane %v464_v49, %v2531_v25 }
 0x634   :  { %v1989_v55 = vmul.f32 -1.442695, %v1504_v51  ;;  %v479_v51 = vrot.slane %v464_v49, %v2529_v22  ;;  %v495_v52 = vrot.slane %v474_v50, %v2529_v22  ;;  %v499_v54 = vrot.slane %v474_v50, %v2531_v25 }
 0x635   :  { %v1990_v57 = vmul.f32 -1.442695, %v1511_v56 }
 0x636   :  { %2298 = vpow2.f32 %v1989_v55  ;;  %v507_v55 = vsel %vm121_vm1, %v479_v51, %v495_v52 }
 0x637   :  { %2300 = vpow2.f32 %v1990_v57 }
 0x640   :  { %v2299_v59 = vpop.eup %2298 }
 0x641   :  { %v1508_v60 = vadd.f32 1.0, %v2299_v59  ;;  %v2301_v37 = vpop.eup %2300 }
 0x642   :  { %v1515_v62 = vadd.f32 1.0, %v2301_v37 }
 0x643   :  { %2302 = vrcp.f32 %v1508_v60  ;;  %v508_v60 = vsel %vm121_vm1, %v483_v53, %v499_v54 }
 0x644   :  { %2304 = vrcp.f32 %v1515_v62 }
 0x64d   :  { %v2303_v0 = vpop.eup %2302 }
 0x64e   :  { %v1519_v2 = vmul.f32 %v2303_v0, %v1518_v63  ;;  %v2305_v5 = vpop.eup %2304 }
 0x64f   :  { %v1522_v6 = vsub.f32 1.0, %v2305_v5  ;;  %v1524_v13 = vmul.f32 %v2305_v5, %v2669_v40 }
 0x650   :  { %v1520_v4 = vadd.f32 %v1519_v2, %v399_v1  ;;  %v503_v2 = vrot.slane %v474_v50, %v2539_v42 }
 0x652   :  { %2306 = vtanh.f32 %v1520_v4 }
 0x65c   :  { %v2307_v11 = vpop.eup %2306 }
 0x65d   :  { %v1523_v12 = vmul.f32 %v2307_v11, %v1522_v6 }
 0x65f   :  { %v2697_v14 = vadd.f32 %v1524_v13, %v1523_v12 }
 0x661   :  { %1991 = vmatmul.mubr.msk.f32.vlgmr.msra.gmra.mrb[12].mxu0 %vm529_vm2, %v2697_v14  ;;  %2114 = vmatmul.mubr.msk.f32.vlgmr.msra.gmra.mrb[12].mxu1 %vm529_vm2, %v2697_v14 }
 0x662   :  { %2228 = vmatpush1.bf16.msra.mxu0 %v2495_v9  ;;  %2235 = vmatpush3.bf16.msra.mxu1 %v2505_v18  ;;  %v419_v9 = vld [vmem:[%s418_s26] ss:$8 sm:$0x7] }
 0x663   :  { %2230 = vmatprep.subr.bf16.mxu0 %v2497_v10  ;;  %2236 = vmatprep.subr.bf16.mxu1 %v2419_v8  ;;  %v409_v8 = vld [vmem:[%s408_s25] ss:$8 sm:$0x7]  ;;  %v440_v10 = vrot.slane %v419_v9, %v2529_v22  ;;  %v444_v18 = vrot.slane %v419_v9, %v2531_v25  ;;  %v448_v33 = vrot.slane %v419_v9, %v2539_v42 }
 0x664   :  { %1759 = vmatprep.mubr.f32.mxu0 %v2418_v7  ;;  %2124 = vmatprep.mubr.msk.f32.mxu1 %vm2420_vm0, %v2418_v7  ;;  %v424_v7 = vrot.slane %v409_v8, %v2529_v22  ;;  %v432_v32 = vrot.slane %v409_v8, %v2539_v42 }
 0x666   :  { %2232 = vmatpush1.bf16.msra.mxu0 %v2503_v17  ;;  %2238 = vmatpush3.bf16.msra.mxu1 %v2509_v19  ;;  %v428_v17 = vrot.slane %v409_v8, %v2531_v25  ;;  %v452_v19 = vsel %vm121_vm1, %v424_v7, %v440_v10  ;;  %v454_v38 = vsel %vm121_vm1, %v432_v32, %v448_v33  ;;  %v1864_v10 = vrot.slane %v2697_v14, 6 }
 0x667   :  { %v487_v25 = vrot.slane %v464_v49, %v2539_v42 }
 0x668   :  { %v453_v21 = vsel %vm121_vm1, %v428_v17, %v444_v18  ;;  %v1877_v42 = vsel %vm1871_vm3, %v2669_v40, %v1864_v10 }
 0x669   :  { %v509_v11 = vsel %vm121_vm1, %v487_v25, %v503_v2 }
 0x734   :  { %v1595_v15 = vpop.f32.mrb[12].mxu0  ;;  %v1666_v16 = vpop.f32.mrb[12].mxu1 }
 0x735   :  { %v1670_v20 = vadd.f32 %v1595_v15, %v452_v19  ;;  %v1597_v23 = vpop.f32.mrb[13].mxu0  ;;  %v2115_v24 = vpop.f32.mrb[13].mxu1  ;;  %v1684_v35 = vadd.f32 %v2541_v44, %v1666_v16 }
 0x736   :  { %v1677_v27 = vadd.f32 %v1597_v23, %v453_v21 }
 0x737   :  { %v1993_v26 = vmul.f32 -1.442695, %v1670_v20 }
 0x738   :  { %v1994_v28 = vmul.f32 -1.442695, %v1677_v27 }
 0x739   :  { %2308 = vpow2.f32 %v1993_v26 }
 0x73a   :  { %2310 = vpow2.f32 %v1994_v28 }
 0x743   :  { %v2309_v29 = vpop.eup %2308 }
 0x744   :  { %v1674_v30 = vadd.f32 1.0, %v2309_v29  ;;  %v2311_v31 = vpop.eup %2310 }
 0x745   :  { %v1681_v34 = vadd.f32 1.0, %v2311_v31 }
 0x746   :  { %2312 = vrcp.f32 %v1674_v30 }
 0x747   :  { %2314 = vrcp.f32 %v1681_v34 }
 0x750   :  { %v2313_v36 = vpop.eup %2312 }
 0x751   :  { %v1685_v39 = vmul.f32 %v2313_v36, %v1684_v35  ;;  %v2315_v43 = vpop.eup %2314 }
 0x752   :  { %v1688_v45 = vsub.f32 1.0, %v2315_v43  ;;  %v1690_v47 = vmul.f32 %v2315_v43, %v2697_v14 }
 0x753   :  { %v1686_v41 = vadd.f32 %v1685_v39, %v454_v38 }
 0x755   :  { %2316 = vtanh.f32 %v1686_v41 }
 0x75f   :  { %v2317_v3 = vpop.eup %2316 }
 0x760   :  { %v1689_v46 = vmul.f32 %v2317_v3, %v1688_v45 }
 0x762   :  { %v1691_v48 = vadd.f32 %v1690_v47, %v1689_v46 }
 0x764   :  { %1995 = vmatmul.mubr.msk.f32.vlgmr.msra.gmra.mrb[14].mxu0 %vm529_vm2, %v1691_v48  ;;  %2125 = vmatmul.mubr.msk.f32.vlgmr.msra.gmra.mrb[14].mxu1 %vm529_vm2, %v1691_v48  ;;  %v1866_v19 = vrot.slane %v1691_v48, 4 }
 0x766   :  { %v1878_v16 = vsel %vm1873_vm4, %v1877_v42, %v1866_v19 }
 0x837   :  { %v1761_v56 = vpop.f32.mrb[14].mxu0  ;;  %v1832_v57 = vpop.f32.mrb[14].mxu1 }
 0x838   :  { %v1836_v59 = vadd.f32 %v1761_v56, %v507_v55  ;;  %v1763_v37 = vpop.f32.mrb[15].mxu0  ;;  %v2126_v61 = vpop.f32.mrb[15].mxu1  ;;  %v1850_v5 = vadd.f32 %v2541_v44, %v1832_v57 }
 0x839   :  { %v1843_v62 = vadd.f32 %v1763_v37, %v508_v60 }
 0x83a   :  { %v1997_v58 = vmul.f32 -1.442695, %v1836_v59 }
 0x83b   :  { %v1998_v63 = vmul.f32 -1.442695, %v1843_v62 }
 0x83c   :  { %2318 = vpow2.f32 %v1997_v58 }
 0x83d   :  { %2320 = vpow2.f32 %v1998_v63 }
 0x846   :  { %v2319_v0 = vpop.eup %2318 }
 0x847   :  { %v1840_v22 = vadd.f32 1.0, %v2319_v0  ;;  %v2321_v1 = vpop.eup %2320 }
 0x848   :  { %v1847_v4 = vadd.f32 1.0, %v2321_v1 }
 0x849   :  { %2322 = vrcp.f32 %v1840_v22 }
 0x84a   :  { %2324 = vrcp.f32 %v1847_v4 }
 0x853   :  { %v2323_v6 = vpop.eup %2322 }
 0x854   :  { %v1851_v12 = vmul.f32 %v2323_v6, %v1850_v5  ;;  %v2325_v8 = vpop.eup %2324 }
 0x855   :  { %v1854_v9 = vsub.f32 1.0, %v2325_v8  ;;  %v1856_v18 = vmul.f32 %v2325_v8, %v1691_v48 }
 0x856   :  { %v1852_v13 = vadd.f32 %v1851_v12, %v509_v11 }
 0x858   :  { %2326 = vtanh.f32 %v1852_v13 }
 0x862   :  { %v2327_v7 = vpop.eup %2326 }
 0x863   :  { %v1855_v17 = vmul.f32 %v2327_v7, %v1854_v9 }
 0x865   :  { %v1857_v15 = vadd.f32 %v1856_v18, %v1855_v17 }
 0x867   :  { %v1869_v44 = vrot.slane %v1857_v15, 2 }
 0x869   :  { %v1879_v20 = vsel %vm1875_vm5, %v1878_v16, %v1869_v44 }
 0x86a   :  { %1881 = vst [vmem:[%s2747_s4 + $0x8] sm:$0xff] %v1879_v20 }
 0x86b   :  { %1886 = vsyncpa [#allocation3], 1 }
 0x86c   :  { %1887 = vsyncpa [#allocation7], 1 }
 0x86d   :  { %1888 = vsyncpa [#allocation4], 1 }

</bundles_post_ra>
